<compile_context>
chip_gen: v7x
topology: tpu7x:2x2x1
jax: 0.10.0
libtpu: 0.0.40
codegen_flags: <defaults>
</compile_context>

<pallas_src>
import functools

import jax
import jax.numpy as jnp
from jax.experimental import pallas as pl
from jax.experimental.pallas import tpu as pltpu

# ---------------- model config (small shapes consistent with the module) ----
N_INPUT = 4        # n = df_train.values.shape[1] - 1  (synthetic small choice)
N_HIDDEN = 32      # n_hidden scaled down so 4H = 128 = one full lane vreg
N_LAYERS = 2
N_OUTPUT = 1


# ---------------- Pallas kernel ----------------
def fused_rnn_kernel(x_ref,
                     w_ih0_ref, w_hh0_ref, b0_ref,
                     w_ih1_ref, w_hh1_ref, b1_ref,
                     w_out_ref, b_out_ref,
                     out_ref,
                     hseq_scr,
                     *, T):
    """Whole forward pass in one grid=() invocation.

    x_ref:     (T*B, D) f32   time-major input slab (wrapper did the transpose)
    w_ih0_ref: (D, 4H) f32    layer-0 input->gates  (g-gate columns pre-scaled by 2)
    w_hh0_ref: (H, 4H) bf16   layer-0 hidden->gates (pre-scaled)
    w_ih1_ref: (H, 4H) bf16   layer-1 input->gates  (pre-scaled)
    w_hh1_ref: (H, 4H) bf16   layer-1 hidden->gates (pre-scaled)
    b0/b1_ref: (1, 4H) f32    combined b_ih + b_hh  (pre-scaled)
    w_out_ref: (H, O) f32, b_out_ref: (1, O) f32
    out_ref:   (T*B, O) f32   time-major output slab
    hseq_scr:  (T*B, H) f32   layer-1 hidden sequence (input of the head matmul)
    """
    TB, _ = x_ref.shape
    B = TB // T
    H = w_hh0_ref.shape[0]

    # ---- layer-0 input projection hoisted out of the recurrence (one matmul) ----
    gx0 = jnp.dot(x_ref[...], w_ih0_ref[...],
                  preferred_element_type=jnp.float32) + b0_ref[...]      # (T*B, 4H)

    w_hh0 = w_hh0_ref[...]            # bf16 weights stay resident
    w_ih1 = w_ih1_ref[...]
    w_hh1 = w_hh1_ref[...]
    b1 = b1_ref[...]

    def gate_math(gates, c_prev):
        # one full-vreg sigmoid; g columns were pre-scaled by 2 so
        # tanh(g) == 2*sigmoid(2g) - 1
        s = jax.nn.sigmoid(gates)
        i_g = s[:, 0 * H:1 * H]
        f_g = s[:, 1 * H:2 * H]
        g_g = 2.0 * s[:, 2 * H:3 * H] - 1.0
        o_g = s[:, 3 * H:4 * H]
        c_new = f_g * c_prev + i_g * g_g
        h_new = o_g * jnp.tanh(c_new)
        return h_new, c_new

    def l0_step(t, h, c):
        gates = gx0[t * B:(t + 1) * B, :] + jnp.dot(
            h.astype(jnp.bfloat16), w_hh0, preferred_element_type=jnp.float32)
        return gate_math(gates, c)

    def l1_step(h0_in, h, c):
        gates = (jnp.dot(h0_in.astype(jnp.bfloat16), w_ih1,
                         preferred_element_type=jnp.float32)
                 + jnp.dot(h.astype(jnp.bfloat16), w_hh1,
                           preferred_element_type=jnp.float32)
                 + b1)
        return gate_math(gates, c)

    zeros = jnp.zeros((B, H), jnp.float32)

    # ---- wavefronted recurrence: per iteration, layer-0 step t and layer-1 step t-1
    h0, c0 = l0_step(0, zeros, zeros)          # prologue: layer-0, time 0
    h1, c1 = zeros, zeros
    for t in range(1, T):                      # static unroll, T is small
        h1, c1 = l1_step(h0, h1, c1)           # layer-1, time t-1 (uses old h0)
        hseq_scr[pl.ds((t - 1) * B, B), :] = h1
        h0, c0 = l0_step(t, h0, c0)            # layer-0, time t (independent chain)
    h1, c1 = l1_step(h0, h1, c1)               # epilogue: layer-1, time T-1
    hseq_scr[pl.ds((T - 1) * B, B), :] = h1

    # ---- fused linear head, single writeback ----
    out_ref[...] = jnp.dot(hseq_scr[...], w_out_ref[...],
                           preferred_element_type=jnp.float32) + b_out_ref[...]


# ---------------- wrapper ----------------
def _scale_g_gate(a, h):
    """Pre-scale the g-gate (3rd) block of a (*, 4H) tensor by 2 (tanh-via-sigmoid)."""
    scale = jnp.concatenate([
        jnp.ones((2 * h,), a.dtype),
        jnp.full((h,), 2.0, a.dtype),
        jnp.ones((h,), a.dtype),
    ])
    return a * scale


def rnn_forward(params, x_btd):
    """Forward of the PyTorch RNN module: 2-layer LSTM (batch_first) + Linear.

    x_btd: (B, T, n_input) -> (B, T, n_output)
    """
    B, T, D = x_btd.shape
    l0, l1 = params["lstm"]
    H = l0["w_hh"].shape[0]
    w_out = params["out1"]["w"]
    b_out = params["out1"]["b"]
    O = w_out.shape[1]

    # Layout plumbing stays in the wrapper (free XLA work): time-major slabs in/out.
    x_tb = jnp.transpose(x_btd, (1, 0, 2)).reshape(T * B, D)

    # Recurrent-path weights are fed to the MXU in bf16 (accumulation stays f32);
    # the power-of-two g-gate pre-scale is exact in bf16.
    w_ih0 = _scale_g_gate(l0["w_ih"], H)                        # (D, 4H)  f32
    w_hh0 = _scale_g_gate(l0["w_hh"], H).astype(jnp.bfloat16)   # (H, 4H)  bf16
    b0 = _scale_g_gate(l0["b"], H)                              # (1, 4H)  f32
    w_ih1 = _scale_g_gate(l1["w_ih"], H).astype(jnp.bfloat16)
    w_hh1 = _scale_g_gate(l1["w_hh"], H).astype(jnp.bfloat16)
    b1 = _scale_g_gate(l1["b"], H)

    operands = (x_tb, w_ih0, w_hh0, b0, w_ih1, w_hh1, b1, w_out, b_out)
    full2d = lambda a: pl.BlockSpec(a.shape, lambda: (0, 0))

    out_flat = pl.pallas_call(
        functools.partial(fused_rnn_kernel, T=T),
        out_shape=jax.ShapeDtypeStruct((T * B, O), jnp.float32),
        grid=(),
        in_specs=[full2d(a) for a in operands],
        out_specs=pl.BlockSpec((T * B, O), lambda: (0, 0)),
        scratch_shapes=[
            pltpu.VMEM((T * B, H), jnp.float32),   # layer-1 hidden sequence
        ],
    )(*operands)

    # (T*B, O) time-major -> (B, T, O) batch-first, done outside the kernel.
    return jnp.transpose(out_flat.reshape(T, B, O), (1, 0, 2))


def init_params(key, n_input, n_hidden, n_layers, n_output):
    """Deterministic init mimicking PyTorch's U(-1/sqrt(H), 1/sqrt(H))."""
    params = {"lstm": [], "out1": {}}
    k = 1.0 / jnp.sqrt(jnp.float32(n_hidden))
    for layer in range(n_layers):
        d_in = n_input if layer == 0 else n_hidden
        key, k1, k2, k3, k4 = jax.random.split(key, 5)
        w_ih = jax.random.uniform(k1, (4 * n_hidden, d_in), jnp.float32, -k, k)
        w_hh = jax.random.uniform(k2, (4 * n_hidden, n_hidden), jnp.float32, -k, k)
        b_ih = jax.random.uniform(k3, (4 * n_hidden,), jnp.float32, -k, k)
        b_hh = jax.random.uniform(k4, (4 * n_hidden,), jnp.float32, -k, k)
        params["lstm"].append({
            "w_ih": w_ih.T,                        # (d_in, 4H)
            "w_hh": w_hh.T,                        # (H, 4H)
            "b": (b_ih + b_hh)[None, :],           # (1, 4H)
        })
    key, k1, k2 = jax.random.split(key, 3)
    params["out1"]["w"] = jax.random.uniform(
        k1, (n_output, n_hidden), jnp.float32, -k, k).T      # (H, O)
    params["out1"]["b"] = jax.random.uniform(
        k2, (n_output,), jnp.float32, -k, k)[None, :]         # (1, O)
    return params


# ---------------- pure-JAX reference (for correctness check, full f32) ----------------
def rnn_forward_ref(params, x_btd):
    B, T, _ = x_btd.shape
    h_seq = jnp.transpose(x_btd, (1, 0, 2))
    for layer_p in params["lstm"]:
        H = layer_p["w_hh"].shape[0]

        def step(carry, x_t):
            h_prev, c_prev = carry
            gates = x_t @ layer_p["w_ih"] + h_prev @ layer_p["w_hh"] + layer_p["b"]
            i_g = jax.nn.sigmoid(gates[:, 0 * H:1 * H])
            f_g = jax.nn.sigmoid(gates[:, 1 * H:2 * H])
            g_g = jnp.tanh(gates[:, 2 * H:3 * H])
            o_g = jax.nn.sigmoid(gates[:, 3 * H:4 * H])
            c_new = f_g * c_prev + i_g * g_g
            h_new = o_g * jnp.tanh(c_new)
            return (h_new, c_new), h_new

        init = (jnp.zeros((B, H), jnp.float32), jnp.zeros((B, H), jnp.float32))
        _, h_seq = jax.lax.scan(step, init, h_seq)
    r_out = jnp.transpose(h_seq, (1, 0, 2))
    return r_out @ params["out1"]["w"] + params["out1"]["b"]


if __name__ == "__main__":
    key = jax.random.PRNGKey(0)
    k_param, k_x = jax.random.split(key)

    B, T = 2, 8
    params = init_params(k_param, N_INPUT, N_HIDDEN, N_LAYERS, N_OUTPUT)
    x = jax.random.normal(k_x, (B, T, N_INPUT), jnp.float32)

    out = rnn_forward(params, x)
    jax.block_until_ready(out)

    ref = rnn_forward_ref(params, x)
    assert out.shape == (B, T, N_OUTPUT)
    # bf16 recurrent-matmul operands -> relaxed tolerance vs the full-f32 reference.
    assert jnp.allclose(out, ref, atol=2e-2, rtol=2e-2), "mismatch vs reference"

    print("KERNEL_OK")
</pallas_src>

<mosaic_0001>
module attributes {stable_mosaic.version = 11 : i64} {
  func.func @fused_rnn_kernel(%arg0: memref<16x4xf32, #tpu.memory_space<vmem>>, %arg1: memref<4x128xf32, #tpu.memory_space<vmem>>, %arg2: memref<32x128xbf16, #tpu.memory_space<vmem>>, %arg3: memref<1x128xf32, #tpu.memory_space<vmem>>, %arg4: memref<32x128xbf16, #tpu.memory_space<vmem>>, %arg5: memref<32x128xbf16, #tpu.memory_space<vmem>>, %arg6: memref<1x128xf32, #tpu.memory_space<vmem>>, %arg7: memref<32x1xf32, #tpu.memory_space<vmem>>, %arg8: memref<1x1xf32, #tpu.memory_space<vmem>>, %arg9: memref<16x1xf32, #tpu.memory_space<vmem>>, %arg10: memref<16x32xf32, #tpu.memory_space<vmem>>) attributes {dimension_semantics = [], scalar_prefetch = 0 : i64, scratch_operands = 1 : i64, tpu.core_type = #tpu.core_type<tc>} {
    %c0 = arith.constant 0 : index
    %c0_0 = arith.constant 0 : index
    %0 = vector.load %arg0[%c0, %c0_0] : memref<16x4xf32, #tpu.memory_space<vmem>>, vector<16x4xf32>
    %c0_1 = arith.constant 0 : index
    %c0_2 = arith.constant 0 : index
    %1 = vector.load %arg1[%c0_1, %c0_2] : memref<4x128xf32, #tpu.memory_space<vmem>>, vector<4x128xf32>
    %cst = arith.constant dense<0.000000e+00> : vector<16x128xf32>
    %2 = tpu.matmul %0, %1, %cst {dimension_numbers = #tpu.dot_dimension_numbers<[1], [0], [0], [1], [0, 0, 1, 1], [], []>} : vector<16x4xf32>, vector<4x128xf32>, vector<16x128xf32> -> vector<16x128xf32>
    %c0_3 = arith.constant 0 : index
    %c0_4 = arith.constant 0 : index
    %3 = vector.load %arg3[%c0_3, %c0_4] : memref<1x128xf32, #tpu.memory_space<vmem>>, vector<1x128xf32>
    %4 = vector.broadcast %3 : vector<1x128xf32> to vector<16x128xf32>
    %5 = arith.addf %2, %4 : vector<16x128xf32>
    %c0_5 = arith.constant 0 : index
    %c0_6 = arith.constant 0 : index
    %6 = vector.load %arg2[%c0_5, %c0_6] : memref<32x128xbf16, #tpu.memory_space<vmem>>, vector<32x128xbf16>
    %c0_7 = arith.constant 0 : index
    %c0_8 = arith.constant 0 : index
    %7 = vector.load %arg4[%c0_7, %c0_8] : memref<32x128xbf16, #tpu.memory_space<vmem>>, vector<32x128xbf16>
    %c0_9 = arith.constant 0 : index
    %c0_10 = arith.constant 0 : index
    %8 = vector.load %arg5[%c0_9, %c0_10] : memref<32x128xbf16, #tpu.memory_space<vmem>>, vector<32x128xbf16>
    %c0_11 = arith.constant 0 : index
    %c0_12 = arith.constant 0 : index
    %9 = vector.load %arg6[%c0_11, %c0_12] : memref<1x128xf32, #tpu.memory_space<vmem>>, vector<1x128xf32>
    %cst_13 = arith.constant 0.000000e+00 : f32
    %10 = vector.broadcast %cst_13 : f32 to vector<2x32xf32>
    %11 = vector.extract_strided_slice %5 {offsets = [0, 0], sizes = [2, 128], strides = [1, 1]} : vector<16x128xf32> to vector<2x128xf32>
    %12 = arith.truncf %10 : vector<2x32xf32> to vector<2x32xbf16>
    %cst_14 = arith.constant dense<0.000000e+00> : vector<2x128xf32>
    %13 = tpu.matmul %12, %6, %cst_14 {dimension_numbers = #tpu.dot_dimension_numbers<[1], [0], [0], [1], [0, 0, 1, 1], [], []>} : vector<2x32xbf16>, vector<32x128xbf16>, vector<2x128xf32> -> vector<2x128xf32>
    %14 = arith.addf %11, %13 : vector<2x128xf32>
    %15 = arith.negf %14 : vector<2x128xf32>
    %16 = math.exp %15 : vector<2x128xf32>
    %cst_15 = arith.constant 1.000000e+00 : f32
    %17 = vector.broadcast %cst_15 : f32 to vector<2x128xf32>
    %18 = arith.addf %17, %16 : vector<2x128xf32>
    %19 = arith.divf %17, %18 : vector<2x128xf32>
    %20 = vector.extract_strided_slice %19 {offsets = [0, 0], sizes = [2, 32], strides = [1, 1]} : vector<2x128xf32> to vector<2x32xf32>
    %21 = vector.extract_strided_slice %19 {offsets = [0, 32], sizes = [2, 32], strides = [1, 1]} : vector<2x128xf32> to vector<2x32xf32>
    %22 = vector.extract_strided_slice %19 {offsets = [0, 64], sizes = [2, 32], strides = [1, 1]} : vector<2x128xf32> to vector<2x32xf32>
    %cst_16 = arith.constant 2.000000e+00 : f32
    %23 = vector.broadcast %cst_16 : f32 to vector<2x32xf32>
    %24 = arith.mulf %23, %22 : vector<2x32xf32>
    %cst_17 = arith.constant 1.000000e+00 : f32
    %25 = vector.broadcast %cst_17 : f32 to vector<2x32xf32>
    %26 = arith.subf %24, %25 : vector<2x32xf32>
    %27 = vector.extract_strided_slice %19 {offsets = [0, 96], sizes = [2, 32], strides = [1, 1]} : vector<2x128xf32> to vector<2x32xf32>
    %28 = arith.mulf %21, %10 : vector<2x32xf32>
    %29 = arith.mulf %20, %26 : vector<2x32xf32>
    %30 = arith.addf %28, %29 : vector<2x32xf32>
    %31 = math.tanh %30 : vector<2x32xf32>
    %32 = arith.mulf %27, %31 : vector<2x32xf32>
    %33 = arith.truncf %32 : vector<2x32xf32> to vector<2x32xbf16>
    %cst_18 = arith.constant dense<0.000000e+00> : vector<2x128xf32>
    %34 = tpu.matmul %33, %7, %cst_18 {dimension_numbers = #tpu.dot_dimension_numbers<[1], [0], [0], [1], [0, 0, 1, 1], [], []>} : vector<2x32xbf16>, vector<32x128xbf16>, vector<2x128xf32> -> vector<2x128xf32>
    %35 = arith.truncf %10 : vector<2x32xf32> to vector<2x32xbf16>
    %cst_19 = arith.constant dense<0.000000e+00> : vector<2x128xf32>
    %36 = tpu.matmul %35, %8, %cst_19 {dimension_numbers = #tpu.dot_dimension_numbers<[1], [0], [0], [1], [0, 0, 1, 1], [], []>} : vector<2x32xbf16>, vector<32x128xbf16>, vector<2x128xf32> -> vector<2x128xf32>
    %37 = arith.addf %34, %36 : vector<2x128xf32>
    %38 = vector.broadcast %9 : vector<1x128xf32> to vector<2x128xf32>
    %39 = arith.addf %37, %38 : vector<2x128xf32>
    %40 = arith.negf %39 : vector<2x128xf32>
    %41 = math.exp %40 : vector<2x128xf32>
    %cst_20 = arith.constant 1.000000e+00 : f32
    %42 = vector.broadcast %cst_20 : f32 to vector<2x128xf32>
    %43 = arith.addf %42, %41 : vector<2x128xf32>
    %44 = arith.divf %42, %43 : vector<2x128xf32>
    %45 = vector.extract_strided_slice %44 {offsets = [0, 0], sizes = [2, 32], strides = [1, 1]} : vector<2x128xf32> to vector<2x32xf32>
    %46 = vector.extract_strided_slice %44 {offsets = [0, 32], sizes = [2, 32], strides = [1, 1]} : vector<2x128xf32> to vector<2x32xf32>
    %47 = vector.extract_strided_slice %44 {offsets = [0, 64], sizes = [2, 32], strides = [1, 1]} : vector<2x128xf32> to vector<2x32xf32>
    %cst_21 = arith.constant 2.000000e+00 : f32
    %48 = vector.broadcast %cst_21 : f32 to vector<2x32xf32>
    %49 = arith.mulf %48, %47 : vector<2x32xf32>
    %cst_22 = arith.constant 1.000000e+00 : f32
    %50 = vector.broadcast %cst_22 : f32 to vector<2x32xf32>
    %51 = arith.subf %49, %50 : vector<2x32xf32>
    %52 = vector.extract_strided_slice %44 {offsets = [0, 96], sizes = [2, 32], strides = [1, 1]} : vector<2x128xf32> to vector<2x32xf32>
    %53 = arith.mulf %46, %10 : vector<2x32xf32>
    %54 = arith.mulf %45, %51 : vector<2x32xf32>
    %55 = arith.addf %53, %54 : vector<2x32xf32>
    %56 = math.tanh %55 : vector<2x32xf32>
    %57 = arith.mulf %52, %56 : vector<2x32xf32>
    %c0_23 = arith.constant 0 : index
    %c0_24 = arith.constant 0 : index
    %58 = vector.load %arg10[%c0_23, %c0_24] : memref<16x32xf32, #tpu.memory_space<vmem>>, vector<2x32xf32>
    tpu.vector_store %arg10[%c0_23, %c0_24], %57 {strides = array<i32>} : memref<16x32xf32, #tpu.memory_space<vmem>>, vector<2x32xf32>,
    %59 = vector.extract_strided_slice %5 {offsets = [2, 0], sizes = [2, 128], strides = [1, 1]} : vector<16x128xf32> to vector<2x128xf32>
    %60 = arith.truncf %32 : vector<2x32xf32> to vector<2x32xbf16>
    %cst_25 = arith.constant dense<0.000000e+00> : vector<2x128xf32>
    %61 = tpu.matmul %60, %6, %cst_25 {dimension_numbers = #tpu.dot_dimension_numbers<[1], [0], [0], [1], [0, 0, 1, 1], [], []>} : vector<2x32xbf16>, vector<32x128xbf16>, vector<2x128xf32> -> vector<2x128xf32>
    %62 = arith.addf %59, %61 : vector<2x128xf32>
    %63 = arith.negf %62 : vector<2x128xf32>
    %64 = math.exp %63 : vector<2x128xf32>
    %cst_26 = arith.constant 1.000000e+00 : f32
    %65 = vector.broadcast %cst_26 : f32 to vector<2x128xf32>
    %66 = arith.addf %65, %64 : vector<2x128xf32>
    %67 = arith.divf %65, %66 : vector<2x128xf32>
    %68 = vector.extract_strided_slice %67 {offsets = [0, 0], sizes = [2, 32], strides = [1, 1]} : vector<2x128xf32> to vector<2x32xf32>
    %69 = vector.extract_strided_slice %67 {offsets = [0, 32], sizes = [2, 32], strides = [1, 1]} : vector<2x128xf32> to vector<2x32xf32>
    %70 = vector.extract_strided_slice %67 {offsets = [0, 64], sizes = [2, 32], strides = [1, 1]} : vector<2x128xf32> to vector<2x32xf32>
    %cst_27 = arith.constant 2.000000e+00 : f32
    %71 = vector.broadcast %cst_27 : f32 to vector<2x32xf32>
    %72 = arith.mulf %71, %70 : vector<2x32xf32>
    %cst_28 = arith.constant 1.000000e+00 : f32
    %73 = vector.broadcast %cst_28 : f32 to vector<2x32xf32>
    %74 = arith.subf %72, %73 : vector<2x32xf32>
    %75 = vector.extract_strided_slice %67 {offsets = [0, 96], sizes = [2, 32], strides = [1, 1]} : vector<2x128xf32> to vector<2x32xf32>
    %76 = arith.mulf %69, %30 : vector<2x32xf32>
    %77 = arith.mulf %68, %74 : vector<2x32xf32>
    %78 = arith.addf %76, %77 : vector<2x32xf32>
    %79 = math.tanh %78 : vector<2x32xf32>
    %80 = arith.mulf %75, %79 : vector<2x32xf32>
    %81 = arith.truncf %80 : vector<2x32xf32> to vector<2x32xbf16>
    %cst_29 = arith.constant dense<0.000000e+00> : vector<2x128xf32>
    %82 = tpu.matmul %81, %7, %cst_29 {dimension_numbers = #tpu.dot_dimension_numbers<[1], [0], [0], [1], [0, 0, 1, 1], [], []>} : vector<2x32xbf16>, vector<32x128xbf16>, vector<2x128xf32> -> vector<2x128xf32>
    %83 = arith.truncf %57 : vector<2x32xf32> to vector<2x32xbf16>
    %cst_30 = arith.constant dense<0.000000e+00> : vector<2x128xf32>
    %84 = tpu.matmul %83, %8, %cst_30 {dimension_numbers = #tpu.dot_dimension_numbers<[1], [0], [0], [1], [0, 0, 1, 1], [], []>} : vector<2x32xbf16>, vector<32x128xbf16>, vector<2x128xf32> -> vector<2x128xf32>
    %85 = arith.addf %82, %84 : vector<2x128xf32>
    %86 = vector.broadcast %9 : vector<1x128xf32> to vector<2x128xf32>
    %87 = arith.addf %85, %86 : vector<2x128xf32>
    %88 = arith.negf %87 : vector<2x128xf32>
    %89 = math.exp %88 : vector<2x128xf32>
    %cst_31 = arith.constant 1.000000e+00 : f32
    %90 = vector.broadcast %cst_31 : f32 to vector<2x128xf32>
    %91 = arith.addf %90, %89 : vector<2x128xf32>
    %92 = arith.divf %90, %91 : vector<2x128xf32>
    %93 = vector.extract_strided_slice %92 {offsets = [0, 0], sizes = [2, 32], strides = [1, 1]} : vector<2x128xf32> to vector<2x32xf32>
    %94 = vector.extract_strided_slice %92 {offsets = [0, 32], sizes = [2, 32], strides = [1, 1]} : vector<2x128xf32> to vector<2x32xf32>
    %95 = vector.extract_strided_slice %92 {offsets = [0, 64], sizes = [2, 32], strides = [1, 1]} : vector<2x128xf32> to vector<2x32xf32>
    %cst_32 = arith.constant 2.000000e+00 : f32
    %96 = vector.broadcast %cst_32 : f32 to vector<2x32xf32>
    %97 = arith.mulf %96, %95 : vector<2x32xf32>
    %cst_33 = arith.constant 1.000000e+00 : f32
    %98 = vector.broadcast %cst_33 : f32 to vector<2x32xf32>
    %99 = arith.subf %97, %98 : vector<2x32xf32>
    %100 = vector.extract_strided_slice %92 {offsets = [0, 96], sizes = [2, 32], strides = [1, 1]} : vector<2x128xf32> to vector<2x32xf32>
    %101 = arith.mulf %94, %55 : vector<2x32xf32>
    %102 = arith.mulf %93, %99 : vector<2x32xf32>
    %103 = arith.addf %101, %102 : vector<2x32xf32>
    %104 = math.tanh %103 : vector<2x32xf32>
    %105 = arith.mulf %100, %104 : vector<2x32xf32>
    %c2 = arith.constant 2 : index
    %c0_34 = arith.constant 0 : index
    %106 = vector.load %arg10[%c2, %c0_34] : memref<16x32xf32, #tpu.memory_space<vmem>>, vector<2x32xf32>
    tpu.vector_store %arg10[%c2, %c0_34], %105 {strides = array<i32>} : memref<16x32xf32, #tpu.memory_space<vmem>>, vector<2x32xf32>,
    %107 = vector.extract_strided_slice %5 {offsets = [4, 0], sizes = [2, 128], strides = [1, 1]} : vector<16x128xf32> to vector<2x128xf32>
    %108 = arith.truncf %80 : vector<2x32xf32> to vector<2x32xbf16>
    %cst_35 = arith.constant dense<0.000000e+00> : vector<2x128xf32>
    %109 = tpu.matmul %108, %6, %cst_35 {dimension_numbers = #tpu.dot_dimension_numbers<[1], [0], [0], [1], [0, 0, 1, 1], [], []>} : vector<2x32xbf16>, vector<32x128xbf16>, vector<2x128xf32> -> vector<2x128xf32>
    %110 = arith.addf %107, %109 : vector<2x128xf32>
    %111 = arith.negf %110 : vector<2x128xf32>
    %112 = math.exp %111 : vector<2x128xf32>
    %cst_36 = arith.constant 1.000000e+00 : f32
    %113 = vector.broadcast %cst_36 : f32 to vector<2x128xf32>
    %114 = arith.addf %113, %112 : vector<2x128xf32>
    %115 = arith.divf %113, %114 : vector<2x128xf32>
    %116 = vector.extract_strided_slice %115 {offsets = [0, 0], sizes = [2, 32], strides = [1, 1]} : vector<2x128xf32> to vector<2x32xf32>
    %117 = vector.extract_strided_slice %115 {offsets = [0, 32], sizes = [2, 32], strides = [1, 1]} : vector<2x128xf32> to vector<2x32xf32>
    %118 = vector.extract_strided_slice %115 {offsets = [0, 64], sizes = [2, 32], strides = [1, 1]} : vector<2x128xf32> to vector<2x32xf32>
    %cst_37 = arith.constant 2.000000e+00 : f32
    %119 = vector.broadcast %cst_37 : f32 to vector<2x32xf32>
    %120 = arith.mulf %119, %118 : vector<2x32xf32>
    %cst_38 = arith.constant 1.000000e+00 : f32
    %121 = vector.broadcast %cst_38 : f32 to vector<2x32xf32>
    %122 = arith.subf %120, %121 : vector<2x32xf32>
    %123 = vector.extract_strided_slice %115 {offsets = [0, 96], sizes = [2, 32], strides = [1, 1]} : vector<2x128xf32> to vector<2x32xf32>
    %124 = arith.mulf %117, %78 : vector<2x32xf32>
    %125 = arith.mulf %116, %122 : vector<2x32xf32>
    %126 = arith.addf %124, %125 : vector<2x32xf32>
    %127 = math.tanh %126 : vector<2x32xf32>
    %128 = arith.mulf %123, %127 : vector<2x32xf32>
    %129 = arith.truncf %128 : vector<2x32xf32> to vector<2x32xbf16>
    %cst_39 = arith.constant dense<0.000000e+00> : vector<2x128xf32>
    %130 = tpu.matmul %129, %7, %cst_39 {dimension_numbers = #tpu.dot_dimension_numbers<[1], [0], [0], [1], [0, 0, 1, 1], [], []>} : vector<2x32xbf16>, vector<32x128xbf16>, vector<2x128xf32> -> vector<2x128xf32>
    %131 = arith.truncf %105 : vector<2x32xf32> to vector<2x32xbf16>
    %cst_40 = arith.constant dense<0.000000e+00> : vector<2x128xf32>
    %132 = tpu.matmul %131, %8, %cst_40 {dimension_numbers = #tpu.dot_dimension_numbers<[1], [0], [0], [1], [0, 0, 1, 1], [], []>} : vector<2x32xbf16>, vector<32x128xbf16>, vector<2x128xf32> -> vector<2x128xf32>
    %133 = arith.addf %130, %132 : vector<2x128xf32>
    %134 = vector.broadcast %9 : vector<1x128xf32> to vector<2x128xf32>
    %135 = arith.addf %133, %134 : vector<2x128xf32>
    %136 = arith.negf %135 : vector<2x128xf32>
    %137 = math.exp %136 : vector<2x128xf32>
    %cst_41 = arith.constant 1.000000e+00 : f32
    %138 = vector.broadcast %cst_41 : f32 to vector<2x128xf32>
    %139 = arith.addf %138, %137 : vector<2x128xf32>
    %140 = arith.divf %138, %139 : vector<2x128xf32>
    %141 = vector.extract_strided_slice %140 {offsets = [0, 0], sizes = [2, 32], strides = [1, 1]} : vector<2x128xf32> to vector<2x32xf32>
    %142 = vector.extract_strided_slice %140 {offsets = [0, 32], sizes = [2, 32], strides = [1, 1]} : vector<2x128xf32> to vector<2x32xf32>
    %143 = vector.extract_strided_slice %140 {offsets = [0, 64], sizes = [2, 32], strides = [1, 1]} : vector<2x128xf32> to vector<2x32xf32>
    %cst_42 = arith.constant 2.000000e+00 : f32
    %144 = vector.broadcast %cst_42 : f32 to vector<2x32xf32>
    %145 = arith.mulf %144, %143 : vector<2x32xf32>
    %cst_43 = arith.constant 1.000000e+00 : f32
    %146 = vector.broadcast %cst_43 : f32 to vector<2x32xf32>
    %147 = arith.subf %145, %146 : vector<2x32xf32>
    %148 = vector.extract_strided_slice %140 {offsets = [0, 96], sizes = [2, 32], strides = [1, 1]} : vector<2x128xf32> to vector<2x32xf32>
    %149 = arith.mulf %142, %103 : vector<2x32xf32>
    %150 = arith.mulf %141, %147 : vector<2x32xf32>
    %151 = arith.addf %149, %150 : vector<2x32xf32>
    %152 = math.tanh %151 : vector<2x32xf32>
    %153 = arith.mulf %148, %152 : vector<2x32xf32>
    %c4 = arith.constant 4 : index
    %c0_44 = arith.constant 0 : index
    %154 = vector.load %arg10[%c4, %c0_44] : memref<16x32xf32, #tpu.memory_space<vmem>>, vector<2x32xf32>
    tpu.vector_store %arg10[%c4, %c0_44], %153 {strides = array<i32>} : memref<16x32xf32, #tpu.memory_space<vmem>>, vector<2x32xf32>,
    %155 = vector.extract_strided_slice %5 {offsets = [6, 0], sizes = [2, 128], strides = [1, 1]} : vector<16x128xf32> to vector<2x128xf32>
    %156 = arith.truncf %128 : vector<2x32xf32> to vector<2x32xbf16>
    %cst_45 = arith.constant dense<0.000000e+00> : vector<2x128xf32>
    %157 = tpu.matmul %156, %6, %cst_45 {dimension_numbers = #tpu.dot_dimension_numbers<[1], [0], [0], [1], [0, 0, 1, 1], [], []>} : vector<2x32xbf16>, vector<32x128xbf16>, vector<2x128xf32> -> vector<2x128xf32>
    %158 = arith.addf %155, %157 : vector<2x128xf32>
    %159 = arith.negf %158 : vector<2x128xf32>
    %160 = math.exp %159 : vector<2x128xf32>
    %cst_46 = arith.constant 1.000000e+00 : f32
    %161 = vector.broadcast %cst_46 : f32 to vector<2x128xf32>
    %162 = arith.addf %161, %160 : vector<2x128xf32>
    %163 = arith.divf %161, %162 : vector<2x128xf32>
    %164 = vector.extract_strided_slice %163 {offsets = [0, 0], sizes = [2, 32], strides = [1, 1]} : vector<2x128xf32> to vector<2x32xf32>
    %165 = vector.extract_strided_slice %163 {offsets = [0, 32], sizes = [2, 32], strides = [1, 1]} : vector<2x128xf32> to vector<2x32xf32>
    %166 = vector.extract_strided_slice %163 {offsets = [0, 64], sizes = [2, 32], strides = [1, 1]} : vector<2x128xf32> to vector<2x32xf32>
    %cst_47 = arith.constant 2.000000e+00 : f32
    %167 = vector.broadcast %cst_47 : f32 to vector<2x32xf32>
    %168 = arith.mulf %167, %166 : vector<2x32xf32>
    %cst_48 = arith.constant 1.000000e+00 : f32
    %169 = vector.broadcast %cst_48 : f32 to vector<2x32xf32>
    %170 = arith.subf %168, %169 : vector<2x32xf32>
    %171 = vector.extract_strided_slice %163 {offsets = [0, 96], sizes = [2, 32], strides = [1, 1]} : vector<2x128xf32> to vector<2x32xf32>
    %172 = arith.mulf %165, %126 : vector<2x32xf32>
    %173 = arith.mulf %164, %170 : vector<2x32xf32>
    %174 = arith.addf %172, %173 : vector<2x32xf32>
    %175 = math.tanh %174 : vector<2x32xf32>
    %176 = arith.mulf %171, %175 : vector<2x32xf32>
    %177 = arith.truncf %176 : vector<2x32xf32> to vector<2x32xbf16>
    %cst_49 = arith.constant dense<0.000000e+00> : vector<2x128xf32>
    %178 = tpu.matmul %177, %7, %cst_49 {dimension_numbers = #tpu.dot_dimension_numbers<[1], [0], [0], [1], [0, 0, 1, 1], [], []>} : vector<2x32xbf16>, vector<32x128xbf16>, vector<2x128xf32> -> vector<2x128xf32>
    %179 = arith.truncf %153 : vector<2x32xf32> to vector<2x32xbf16>
    %cst_50 = arith.constant dense<0.000000e+00> : vector<2x128xf32>
    %180 = tpu.matmul %179, %8, %cst_50 {dimension_numbers = #tpu.dot_dimension_numbers<[1], [0], [0], [1], [0, 0, 1, 1], [], []>} : vector<2x32xbf16>, vector<32x128xbf16>, vector<2x128xf32> -> vector<2x128xf32>
    %181 = arith.addf %178, %180 : vector<2x128xf32>
    %182 = vector.broadcast %9 : vector<1x128xf32> to vector<2x128xf32>
    %183 = arith.addf %181, %182 : vector<2x128xf32>
    %184 = arith.negf %183 : vector<2x128xf32>
    %185 = math.exp %184 : vector<2x128xf32>
    %cst_51 = arith.constant 1.000000e+00 : f32
    %186 = vector.broadcast %cst_51 : f32 to vector<2x128xf32>
    %187 = arith.addf %186, %185 : vector<2x128xf32>
    %188 = arith.divf %186, %187 : vector<2x128xf32>
    %189 = vector.extract_strided_slice %188 {offsets = [0, 0], sizes = [2, 32], strides = [1, 1]} : vector<2x128xf32> to vector<2x32xf32>
    %190 = vector.extract_strided_slice %188 {offsets = [0, 32], sizes = [2, 32], strides = [1, 1]} : vector<2x128xf32> to vector<2x32xf32>
    %191 = vector.extract_strided_slice %188 {offsets = [0, 64], sizes = [2, 32], strides = [1, 1]} : vector<2x128xf32> to vector<2x32xf32>
    %cst_52 = arith.constant 2.000000e+00 : f32
    %192 = vector.broadcast %cst_52 : f32 to vector<2x32xf32>
    %193 = arith.mulf %192, %191 : vector<2x32xf32>
    %cst_53 = arith.constant 1.000000e+00 : f32
    %194 = vector.broadcast %cst_53 : f32 to vector<2x32xf32>
    %195 = arith.subf %193, %194 : vector<2x32xf32>
    %196 = vector.extract_strided_slice %188 {offsets = [0, 96], sizes = [2, 32], strides = [1, 1]} : vector<2x128xf32> to vector<2x32xf32>
    %197 = arith.mulf %190, %151 : vector<2x32xf32>
    %198 = arith.mulf %189, %195 : vector<2x32xf32>
    %199 = arith.addf %197, %198 : vector<2x32xf32>
    %200 = math.tanh %199 : vector<2x32xf32>
    %201 = arith.mulf %196, %200 : vector<2x32xf32>
    %c6 = arith.constant 6 : index
    %c0_54 = arith.constant 0 : index
    %202 = vector.load %arg10[%c6, %c0_54] : memref<16x32xf32, #tpu.memory_space<vmem>>, vector<2x32xf32>
    tpu.vector_store %arg10[%c6, %c0_54], %201 {strides = array<i32>} : memref<16x32xf32, #tpu.memory_space<vmem>>, vector<2x32xf32>,
    %203 = vector.extract_strided_slice %5 {offsets = [8, 0], sizes = [2, 128], strides = [1, 1]} : vector<16x128xf32> to vector<2x128xf32>
    %204 = arith.truncf %176 : vector<2x32xf32> to vector<2x32xbf16>
    %cst_55 = arith.constant dense<0.000000e+00> : vector<2x128xf32>
    %205 = tpu.matmul %204, %6, %cst_55 {dimension_numbers = #tpu.dot_dimension_numbers<[1], [0], [0], [1], [0, 0, 1, 1], [], []>} : vector<2x32xbf16>, vector<32x128xbf16>, vector<2x128xf32> -> vector<2x128xf32>
    %206 = arith.addf %203, %205 : vector<2x128xf32>
    %207 = arith.negf %206 : vector<2x128xf32>
    %208 = math.exp %207 : vector<2x128xf32>
    %cst_56 = arith.constant 1.000000e+00 : f32
    %209 = vector.broadcast %cst_56 : f32 to vector<2x128xf32>
    %210 = arith.addf %209, %208 : vector<2x128xf32>
    %211 = arith.divf %209, %210 : vector<2x128xf32>
    %212 = vector.extract_strided_slice %211 {offsets = [0, 0], sizes = [2, 32], strides = [1, 1]} : vector<2x128xf32> to vector<2x32xf32>
    %213 = vector.extract_strided_slice %211 {offsets = [0, 32], sizes = [2, 32], strides = [1, 1]} : vector<2x128xf32> to vector<2x32xf32>
    %214 = vector.extract_strided_slice %211 {offsets = [0, 64], sizes = [2, 32], strides = [1, 1]} : vector<2x128xf32> to vector<2x32xf32>
    %cst_57 = arith.constant 2.000000e+00 : f32
    %215 = vector.broadcast %cst_57 : f32 to vector<2x32xf32>
    %216 = arith.mulf %215, %214 : vector<2x32xf32>
    %cst_58 = arith.constant 1.000000e+00 : f32
    %217 = vector.broadcast %cst_58 : f32 to vector<2x32xf32>
    %218 = arith.subf %216, %217 : vector<2x32xf32>
    %219 = vector.extract_strided_slice %211 {offsets = [0, 96], sizes = [2, 32], strides = [1, 1]} : vector<2x128xf32> to vector<2x32xf32>
    %220 = arith.mulf %213, %174 : vector<2x32xf32>
    %221 = arith.mulf %212, %218 : vector<2x32xf32>
    %222 = arith.addf %220, %221 : vector<2x32xf32>
    %223 = math.tanh %222 : vector<2x32xf32>
    %224 = arith.mulf %219, %223 : vector<2x32xf32>
    %225 = arith.truncf %224 : vector<2x32xf32> to vector<2x32xbf16>
    %cst_59 = arith.constant dense<0.000000e+00> : vector<2x128xf32>
    %226 = tpu.matmul %225, %7, %cst_59 {dimension_numbers = #tpu.dot_dimension_numbers<[1], [0], [0], [1], [0, 0, 1, 1], [], []>} : vector<2x32xbf16>, vector<32x128xbf16>, vector<2x128xf32> -> vector<2x128xf32>
    %227 = arith.truncf %201 : vector<2x32xf32> to vector<2x32xbf16>
    %cst_60 = arith.constant dense<0.000000e+00> : vector<2x128xf32>
    %228 = tpu.matmul %227, %8, %cst_60 {dimension_numbers = #tpu.dot_dimension_numbers<[1], [0], [0], [1], [0, 0, 1, 1], [], []>} : vector<2x32xbf16>, vector<32x128xbf16>, vector<2x128xf32> -> vector<2x128xf32>
    %229 = arith.addf %226, %228 : vector<2x128xf32>
    %230 = vector.broadcast %9 : vector<1x128xf32> to vector<2x128xf32>
    %231 = arith.addf %229, %230 : vector<2x128xf32>
    %232 = arith.negf %231 : vector<2x128xf32>
    %233 = math.exp %232 : vector<2x128xf32>
    %cst_61 = arith.constant 1.000000e+00 : f32
    %234 = vector.broadcast %cst_61 : f32 to vector<2x128xf32>
    %235 = arith.addf %234, %233 : vector<2x128xf32>
    %236 = arith.divf %234, %235 : vector<2x128xf32>
    %237 = vector.extract_strided_slice %236 {offsets = [0, 0], sizes = [2, 32], strides = [1, 1]} : vector<2x128xf32> to vector<2x32xf32>
    %238 = vector.extract_strided_slice %236 {offsets = [0, 32], sizes = [2, 32], strides = [1, 1]} : vector<2x128xf32> to vector<2x32xf32>
    %239 = vector.extract_strided_slice %236 {offsets = [0, 64], sizes = [2, 32], strides = [1, 1]} : vector<2x128xf32> to vector<2x32xf32>
    %cst_62 = arith.constant 2.000000e+00 : f32
    %240 = vector.broadcast %cst_62 : f32 to vector<2x32xf32>
    %241 = arith.mulf %240, %239 : vector<2x32xf32>
    %cst_63 = arith.constant 1.000000e+00 : f32
    %242 = vector.broadcast %cst_63 : f32 to vector<2x32xf32>
    %243 = arith.subf %241, %242 : vector<2x32xf32>
    %244 = vector.extract_strided_slice %236 {offsets = [0, 96], sizes = [2, 32], strides = [1, 1]} : vector<2x128xf32> to vector<2x32xf32>
    %245 = arith.mulf %238, %199 : vector<2x32xf32>
    %246 = arith.mulf %237, %243 : vector<2x32xf32>
    %247 = arith.addf %245, %246 : vector<2x32xf32>
    %248 = math.tanh %247 : vector<2x32xf32>
    %249 = arith.mulf %244, %248 : vector<2x32xf32>
    %c8 = arith.constant 8 : index
    %c0_64 = arith.constant 0 : index
    %250 = vector.load %arg10[%c8, %c0_64] : memref<16x32xf32, #tpu.memory_space<vmem>>, vector<2x32xf32>
    tpu.vector_store %arg10[%c8, %c0_64], %249 {strides = array<i32>} : memref<16x32xf32, #tpu.memory_space<vmem>>, vector<2x32xf32>,
    %251 = vector.extract_strided_slice %5 {offsets = [10, 0], sizes = [2, 128], strides = [1, 1]} : vector<16x128xf32> to vector<2x128xf32>
    %252 = arith.truncf %224 : vector<2x32xf32> to vector<2x32xbf16>
    %cst_65 = arith.constant dense<0.000000e+00> : vector<2x128xf32>
    %253 = tpu.matmul %252, %6, %cst_65 {dimension_numbers = #tpu.dot_dimension_numbers<[1], [0], [0], [1], [0, 0, 1, 1], [], []>} : vector<2x32xbf16>, vector<32x128xbf16>, vector<2x128xf32> -> vector<2x128xf32>
    %254 = arith.addf %251, %253 : vector<2x128xf32>
    %255 = arith.negf %254 : vector<2x128xf32>
    %256 = math.exp %255 : vector<2x128xf32>
    %cst_66 = arith.constant 1.000000e+00 : f32
    %257 = vector.broadcast %cst_66 : f32 to vector<2x128xf32>
    %258 = arith.addf %257, %256 : vector<2x128xf32>
    %259 = arith.divf %257, %258 : vector<2x128xf32>
    %260 = vector.extract_strided_slice %259 {offsets = [0, 0], sizes = [2, 32], strides = [1, 1]} : vector<2x128xf32> to vector<2x32xf32>
    %261 = vector.extract_strided_slice %259 {offsets = [0, 32], sizes = [2, 32], strides = [1, 1]} : vector<2x128xf32> to vector<2x32xf32>
    %262 = vector.extract_strided_slice %259 {offsets = [0, 64], sizes = [2, 32], strides = [1, 1]} : vector<2x128xf32> to vector<2x32xf32>
    %cst_67 = arith.constant 2.000000e+00 : f32
    %263 = vector.broadcast %cst_67 : f32 to vector<2x32xf32>
    %264 = arith.mulf %263, %262 : vector<2x32xf32>
    %cst_68 = arith.constant 1.000000e+00 : f32
    %265 = vector.broadcast %cst_68 : f32 to vector<2x32xf32>
    %266 = arith.subf %264, %265 : vector<2x32xf32>
    %267 = vector.extract_strided_slice %259 {offsets = [0, 96], sizes = [2, 32], strides = [1, 1]} : vector<2x128xf32> to vector<2x32xf32>
    %268 = arith.mulf %261, %222 : vector<2x32xf32>
    %269 = arith.mulf %260, %266 : vector<2x32xf32>
    %270 = arith.addf %268, %269 : vector<2x32xf32>
    %271 = math.tanh %270 : vector<2x32xf32>
    %272 = arith.mulf %267, %271 : vector<2x32xf32>
    %273 = arith.truncf %272 : vector<2x32xf32> to vector<2x32xbf16>
    %cst_69 = arith.constant dense<0.000000e+00> : vector<2x128xf32>
    %274 = tpu.matmul %273, %7, %cst_69 {dimension_numbers = #tpu.dot_dimension_numbers<[1], [0], [0], [1], [0, 0, 1, 1], [], []>} : vector<2x32xbf16>, vector<32x128xbf16>, vector<2x128xf32> -> vector<2x128xf32>
    %275 = arith.truncf %249 : vector<2x32xf32> to vector<2x32xbf16>
    %cst_70 = arith.constant dense<0.000000e+00> : vector<2x128xf32>
    %276 = tpu.matmul %275, %8, %cst_70 {dimension_numbers = #tpu.dot_dimension_numbers<[1], [0], [0], [1], [0, 0, 1, 1], [], []>} : vector<2x32xbf16>, vector<32x128xbf16>, vector<2x128xf32> -> vector<2x128xf32>
    %277 = arith.addf %274, %276 : vector<2x128xf32>
    %278 = vector.broadcast %9 : vector<1x128xf32> to vector<2x128xf32>
    %279 = arith.addf %277, %278 : vector<2x128xf32>
    %280 = arith.negf %279 : vector<2x128xf32>
    %281 = math.exp %280 : vector<2x128xf32>
    %cst_71 = arith.constant 1.000000e+00 : f32
    %282 = vector.broadcast %cst_71 : f32 to vector<2x128xf32>
    %283 = arith.addf %282, %281 : vector<2x128xf32>
    %284 = arith.divf %282, %283 : vector<2x128xf32>
    %285 = vector.extract_strided_slice %284 {offsets = [0, 0], sizes = [2, 32], strides = [1, 1]} : vector<2x128xf32> to vector<2x32xf32>
    %286 = vector.extract_strided_slice %284 {offsets = [0, 32], sizes = [2, 32], strides = [1, 1]} : vector<2x128xf32> to vector<2x32xf32>
    %287 = vector.extract_strided_slice %284 {offsets = [0, 64], sizes = [2, 32], strides = [1, 1]} : vector<2x128xf32> to vector<2x32xf32>
    %cst_72 = arith.constant 2.000000e+00 : f32
    %288 = vector.broadcast %cst_72 : f32 to vector<2x32xf32>
    %289 = arith.mulf %288, %287 : vector<2x32xf32>
    %cst_73 = arith.constant 1.000000e+00 : f32
    %290 = vector.broadcast %cst_73 : f32 to vector<2x32xf32>
    %291 = arith.subf %289, %290 : vector<2x32xf32>
    %292 = vector.extract_strided_slice %284 {offsets = [0, 96], sizes = [2, 32], strides = [1, 1]} : vector<2x128xf32> to vector<2x32xf32>
    %293 = arith.mulf %286, %247 : vector<2x32xf32>
    %294 = arith.mulf %285, %291 : vector<2x32xf32>
    %295 = arith.addf %293, %294 : vector<2x32xf32>
    %296 = math.tanh %295 : vector<2x32xf32>
    %297 = arith.mulf %292, %296 : vector<2x32xf32>
    %c10 = arith.constant 10 : index
    %c0_74 = arith.constant 0 : index
    %298 = vector.load %arg10[%c10, %c0_74] : memref<16x32xf32, #tpu.memory_space<vmem>>, vector<2x32xf32>
    tpu.vector_store %arg10[%c10, %c0_74], %297 {strides = array<i32>} : memref<16x32xf32, #tpu.memory_space<vmem>>, vector<2x32xf32>,
    %299 = vector.extract_strided_slice %5 {offsets = [12, 0], sizes = [2, 128], strides = [1, 1]} : vector<16x128xf32> to vector<2x128xf32>
    %300 = arith.truncf %272 : vector<2x32xf32> to vector<2x32xbf16>
    %cst_75 = arith.constant dense<0.000000e+00> : vector<2x128xf32>
    %301 = tpu.matmul %300, %6, %cst_75 {dimension_numbers = #tpu.dot_dimension_numbers<[1], [0], [0], [1], [0, 0, 1, 1], [], []>} : vector<2x32xbf16>, vector<32x128xbf16>, vector<2x128xf32> -> vector<2x128xf32>
    %302 = arith.addf %299, %301 : vector<2x128xf32>
    %303 = arith.negf %302 : vector<2x128xf32>
    %304 = math.exp %303 : vector<2x128xf32>
    %cst_76 = arith.constant 1.000000e+00 : f32
    %305 = vector.broadcast %cst_76 : f32 to vector<2x128xf32>
    %306 = arith.addf %305, %304 : vector<2x128xf32>
    %307 = arith.divf %305, %306 : vector<2x128xf32>
    %308 = vector.extract_strided_slice %307 {offsets = [0, 0], sizes = [2, 32], strides = [1, 1]} : vector<2x128xf32> to vector<2x32xf32>
    %309 = vector.extract_strided_slice %307 {offsets = [0, 32], sizes = [2, 32], strides = [1, 1]} : vector<2x128xf32> to vector<2x32xf32>
    %310 = vector.extract_strided_slice %307 {offsets = [0, 64], sizes = [2, 32], strides = [1, 1]} : vector<2x128xf32> to vector<2x32xf32>
    %cst_77 = arith.constant 2.000000e+00 : f32
    %311 = vector.broadcast %cst_77 : f32 to vector<2x32xf32>
    %312 = arith.mulf %311, %310 : vector<2x32xf32>
    %cst_78 = arith.constant 1.000000e+00 : f32
    %313 = vector.broadcast %cst_78 : f32 to vector<2x32xf32>
    %314 = arith.subf %312, %313 : vector<2x32xf32>
    %315 = vector.extract_strided_slice %307 {offsets = [0, 96], sizes = [2, 32], strides = [1, 1]} : vector<2x128xf32> to vector<2x32xf32>
    %316 = arith.mulf %309, %270 : vector<2x32xf32>
    %317 = arith.mulf %308, %314 : vector<2x32xf32>
    %318 = arith.addf %316, %317 : vector<2x32xf32>
    %319 = math.tanh %318 : vector<2x32xf32>
    %320 = arith.mulf %315, %319 : vector<2x32xf32>
    %321 = arith.truncf %320 : vector<2x32xf32> to vector<2x32xbf16>
    %cst_79 = arith.constant dense<0.000000e+00> : vector<2x128xf32>
    %322 = tpu.matmul %321, %7, %cst_79 {dimension_numbers = #tpu.dot_dimension_numbers<[1], [0], [0], [1], [0, 0, 1, 1], [], []>} : vector<2x32xbf16>, vector<32x128xbf16>, vector<2x128xf32> -> vector<2x128xf32>
    %323 = arith.truncf %297 : vector<2x32xf32> to vector<2x32xbf16>
    %cst_80 = arith.constant dense<0.000000e+00> : vector<2x128xf32>
    %324 = tpu.matmul %323, %8, %cst_80 {dimension_numbers = #tpu.dot_dimension_numbers<[1], [0], [0], [1], [0, 0, 1, 1], [], []>} : vector<2x32xbf16>, vector<32x128xbf16>, vector<2x128xf32> -> vector<2x128xf32>
    %325 = arith.addf %322, %324 : vector<2x128xf32>
    %326 = vector.broadcast %9 : vector<1x128xf32> to vector<2x128xf32>
    %327 = arith.addf %325, %326 : vector<2x128xf32>
    %328 = arith.negf %327 : vector<2x128xf32>
    %329 = math.exp %328 : vector<2x128xf32>
    %cst_81 = arith.constant 1.000000e+00 : f32
    %330 = vector.broadcast %cst_81 : f32 to vector<2x128xf32>
    %331 = arith.addf %330, %329 : vector<2x128xf32>
    %332 = arith.divf %330, %331 : vector<2x128xf32>
    %333 = vector.extract_strided_slice %332 {offsets = [0, 0], sizes = [2, 32], strides = [1, 1]} : vector<2x128xf32> to vector<2x32xf32>
    %334 = vector.extract_strided_slice %332 {offsets = [0, 32], sizes = [2, 32], strides = [1, 1]} : vector<2x128xf32> to vector<2x32xf32>
    %335 = vector.extract_strided_slice %332 {offsets = [0, 64], sizes = [2, 32], strides = [1, 1]} : vector<2x128xf32> to vector<2x32xf32>
    %cst_82 = arith.constant 2.000000e+00 : f32
    %336 = vector.broadcast %cst_82 : f32 to vector<2x32xf32>
    %337 = arith.mulf %336, %335 : vector<2x32xf32>
    %cst_83 = arith.constant 1.000000e+00 : f32
    %338 = vector.broadcast %cst_83 : f32 to vector<2x32xf32>
    %339 = arith.subf %337, %338 : vector<2x32xf32>
    %340 = vector.extract_strided_slice %332 {offsets = [0, 96], sizes = [2, 32], strides = [1, 1]} : vector<2x128xf32> to vector<2x32xf32>
    %341 = arith.mulf %334, %295 : vector<2x32xf32>
    %342 = arith.mulf %333, %339 : vector<2x32xf32>
    %343 = arith.addf %341, %342 : vector<2x32xf32>
    %344 = math.tanh %343 : vector<2x32xf32>
    %345 = arith.mulf %340, %344 : vector<2x32xf32>
    %c12 = arith.constant 12 : index
    %c0_84 = arith.constant 0 : index
    %346 = vector.load %arg10[%c12, %c0_84] : memref<16x32xf32, #tpu.memory_space<vmem>>, vector<2x32xf32>
    tpu.vector_store %arg10[%c12, %c0_84], %345 {strides = array<i32>} : memref<16x32xf32, #tpu.memory_space<vmem>>, vector<2x32xf32>,
    %347 = vector.extract_strided_slice %5 {offsets = [14, 0], sizes = [2, 128], strides = [1, 1]} : vector<16x128xf32> to vector<2x128xf32>
    %348 = arith.truncf %320 : vector<2x32xf32> to vector<2x32xbf16>
    %cst_85 = arith.constant dense<0.000000e+00> : vector<2x128xf32>
    %349 = tpu.matmul %348, %6, %cst_85 {dimension_numbers = #tpu.dot_dimension_numbers<[1], [0], [0], [1], [0, 0, 1, 1], [], []>} : vector<2x32xbf16>, vector<32x128xbf16>, vector<2x128xf32> -> vector<2x128xf32>
    %350 = arith.addf %347, %349 : vector<2x128xf32>
    %351 = arith.negf %350 : vector<2x128xf32>
    %352 = math.exp %351 : vector<2x128xf32>
    %cst_86 = arith.constant 1.000000e+00 : f32
    %353 = vector.broadcast %cst_86 : f32 to vector<2x128xf32>
    %354 = arith.addf %353, %352 : vector<2x128xf32>
    %355 = arith.divf %353, %354 : vector<2x128xf32>
    %356 = vector.extract_strided_slice %355 {offsets = [0, 0], sizes = [2, 32], strides = [1, 1]} : vector<2x128xf32> to vector<2x32xf32>
    %357 = vector.extract_strided_slice %355 {offsets = [0, 32], sizes = [2, 32], strides = [1, 1]} : vector<2x128xf32> to vector<2x32xf32>
    %358 = vector.extract_strided_slice %355 {offsets = [0, 64], sizes = [2, 32], strides = [1, 1]} : vector<2x128xf32> to vector<2x32xf32>
    %cst_87 = arith.constant 2.000000e+00 : f32
    %359 = vector.broadcast %cst_87 : f32 to vector<2x32xf32>
    %360 = arith.mulf %359, %358 : vector<2x32xf32>
    %cst_88 = arith.constant 1.000000e+00 : f32
    %361 = vector.broadcast %cst_88 : f32 to vector<2x32xf32>
    %362 = arith.subf %360, %361 : vector<2x32xf32>
    %363 = vector.extract_strided_slice %355 {offsets = [0, 96], sizes = [2, 32], strides = [1, 1]} : vector<2x128xf32> to vector<2x32xf32>
    %364 = arith.mulf %357, %318 : vector<2x32xf32>
    %365 = arith.mulf %356, %362 : vector<2x32xf32>
    %366 = arith.addf %364, %365 : vector<2x32xf32>
    %367 = math.tanh %366 : vector<2x32xf32>
    %368 = arith.mulf %363, %367 : vector<2x32xf32>
    %369 = arith.truncf %368 : vector<2x32xf32> to vector<2x32xbf16>
    %cst_89 = arith.constant dense<0.000000e+00> : vector<2x128xf32>
    %370 = tpu.matmul %369, %7, %cst_89 {dimension_numbers = #tpu.dot_dimension_numbers<[1], [0], [0], [1], [0, 0, 1, 1], [], []>} : vector<2x32xbf16>, vector<32x128xbf16>, vector<2x128xf32> -> vector<2x128xf32>
    %371 = arith.truncf %345 : vector<2x32xf32> to vector<2x32xbf16>
    %cst_90 = arith.constant dense<0.000000e+00> : vector<2x128xf32>
    %372 = tpu.matmul %371, %8, %cst_90 {dimension_numbers = #tpu.dot_dimension_numbers<[1], [0], [0], [1], [0, 0, 1, 1], [], []>} : vector<2x32xbf16>, vector<32x128xbf16>, vector<2x128xf32> -> vector<2x128xf32>
    %373 = arith.addf %370, %372 : vector<2x128xf32>
    %374 = vector.broadcast %9 : vector<1x128xf32> to vector<2x128xf32>
    %375 = arith.addf %373, %374 : vector<2x128xf32>
    %376 = arith.negf %375 : vector<2x128xf32>
    %377 = math.exp %376 : vector<2x128xf32>
    %cst_91 = arith.constant 1.000000e+00 : f32
    %378 = vector.broadcast %cst_91 : f32 to vector<2x128xf32>
    %379 = arith.addf %378, %377 : vector<2x128xf32>
    %380 = arith.divf %378, %379 : vector<2x128xf32>
    %381 = vector.extract_strided_slice %380 {offsets = [0, 0], sizes = [2, 32], strides = [1, 1]} : vector<2x128xf32> to vector<2x32xf32>
    %382 = vector.extract_strided_slice %380 {offsets = [0, 32], sizes = [2, 32], strides = [1, 1]} : vector<2x128xf32> to vector<2x32xf32>
    %383 = vector.extract_strided_slice %380 {offsets = [0, 64], sizes = [2, 32], strides = [1, 1]} : vector<2x128xf32> to vector<2x32xf32>
    %cst_92 = arith.constant 2.000000e+00 : f32
    %384 = vector.broadcast %cst_92 : f32 to vector<2x32xf32>
    %385 = arith.mulf %384, %383 : vector<2x32xf32>
    %cst_93 = arith.constant 1.000000e+00 : f32
    %386 = vector.broadcast %cst_93 : f32 to vector<2x32xf32>
    %387 = arith.subf %385, %386 : vector<2x32xf32>
    %388 = vector.extract_strided_slice %380 {offsets = [0, 96], sizes = [2, 32], strides = [1, 1]} : vector<2x128xf32> to vector<2x32xf32>
    %389 = arith.mulf %382, %343 : vector<2x32xf32>
    %390 = arith.mulf %381, %387 : vector<2x32xf32>
    %391 = arith.addf %389, %390 : vector<2x32xf32>
    %392 = math.tanh %391 : vector<2x32xf32>
    %393 = arith.mulf %388, %392 : vector<2x32xf32>
    %c14 = arith.constant 14 : index
    %c0_94 = arith.constant 0 : index
    %394 = vector.load %arg10[%c14, %c0_94] : memref<16x32xf32, #tpu.memory_space<vmem>>, vector<2x32xf32>
    tpu.vector_store %arg10[%c14, %c0_94], %393 {strides = array<i32>} : memref<16x32xf32, #tpu.memory_space<vmem>>, vector<2x32xf32>,
    %c0_95 = arith.constant 0 : index
    %c0_96 = arith.constant 0 : index
    %395 = vector.load %arg10[%c0_95, %c0_96] : memref<16x32xf32, #tpu.memory_space<vmem>>, vector<16x32xf32>
    %c0_97 = arith.constant 0 : index
    %c0_98 = arith.constant 0 : index
    %396 = vector.load %arg7[%c0_97, %c0_98] : memref<32x1xf32, #tpu.memory_space<vmem>>, vector<32x1xf32>
    %cst_99 = arith.constant dense<0.000000e+00> : vector<16x1xf32>
    %397 = tpu.matmul %395, %396, %cst_99 {dimension_numbers = #tpu.dot_dimension_numbers<[1], [0], [0], [1], [0, 0, 1, 1], [], []>} : vector<16x32xf32>, vector<32x1xf32>, vector<16x1xf32> -> vector<16x1xf32>
    %c0_100 = arith.constant 0 : index
    %c0_101 = arith.constant 0 : index
    %398 = vector.load %arg8[%c0_100, %c0_101] : memref<1x1xf32, #tpu.memory_space<vmem>>, vector<1x1xf32>
    %399 = vector.broadcast %398 : vector<1x1xf32> to vector<16x1xf32>
    %400 = arith.addf %397, %399 : vector<16x1xf32>
    %c0_102 = arith.constant 0 : index
    %c0_103 = arith.constant 0 : index
    %401 = vector.load %arg9[%c0_102, %c0_103] : memref<16x1xf32, #tpu.memory_space<vmem>>, vector<16x1xf32>
    tpu.vector_store %arg9[%c0_102, %c0_103], %400 {strides = array<i32>} : memref<16x1xf32, #tpu.memory_space<vmem>>, vector<16x1xf32>,
    return
  }
}

</mosaic_0001>

<bundles_post_ra>
// kernel: tpu_custom_call.1
= control target key start
LH: loop header
LB: loop body
LE: loop exit
PB: predicated region body
PF: predicated region fallthrough
CT: control target
= control target key end

     0   :  { %vm52_vm0 = vcmask 1043456   ;;  %v2337_v0 = vmov 0.0   ;;  %vm45_vm1 = vcmask 31744   ;;  %vm2338_vm2 = vmmov 0   ;;  %s2341_s19 = smov 32   ;;  %s2823_s2 = inlined_call_operand.vmem [shape: bf16[32,128], index: 2, kind: input, shape index: {}]   ;;  %s2824_s1 = inlined_call_operand.vmem [shape: f32[4,128], index: 1, kind: input, shape index: {}]   ;;  %s2825_s0 = inlined_call_operand.vmem [shape: f32[16,4], index: 0, kind: input, shape index: {}]   ;;  %s2826_s3 = inlined_call_operand.vmem [shape: f32[1,128], index: 3, kind: input, shape index: {}]   ;;  %s2827_s5 = inlined_call_operand.vmem [shape: bf16[32,128], index: 5, kind: input, shape index: {}]   ;;  %s2828_s4 = inlined_call_operand.vmem [shape: bf16[32,128], index: 4, kind: input, shape index: {}]   ;;  %s2829_s6 = inlined_call_operand.vmem [shape: f32[1,128], index: 6, kind: input, shape index: {}]   ;;  %s2830_s7 = inlined_call_operand.vmem [shape: f32[32,1], index: 7, kind: input, shape index: {}]   ;;  %s2831_s8 = inlined_call_operand.<no memory space> [shape: f32[1,1], index: 8, kind: input, shape index: {}]   ;;  %s2832_s9 = inlined_call_operand.vmem [shape: f32[16,1], index: 9, kind: output, shape index: {}]  }
   0x1   :  { %2012 = vmatprep.subr.bf16.mxu1 %v2337_v0  ;;  %v2396_v1 = vld [vmem:[%s2823_s2] sm:$0xff]   ;;  %2016 = vmatprep.mubr.msk.bf16.mxu1 %vm2338_vm2, %v2337_v0  ;;  %v36_v4 = vld [vmem:[%s2825_s0 + $0x8] sm:$0xff]  ;;  %v2339_v6 = vmov 0   ;;  %vm156_vm3 = vcmask 261120   ;;  %vm373_vm4 = vcmask 254976   ;;  %vm1851_vm5 = vcmask 7168  }
   0x2   :  { %v37_v2 = vld [vmem:[%s2824_s1] sm:$0xf]  ;;  %2013 = vmatpush3.bf16.msra.mxu1 %v2396_v1  ;;  %v2413_v5 = vld [vmem:[%s2823_s2 + $0x8] sm:$0xff]  }
   0x3   :  { %v35_v3 = vld [vmem:[%s2825_s0] sm:$0xff]  ;;  %2007 = vmatprep.subr.msk.mxu0 %vm52_vm0, %v37_v2  ;;  %2014 = vmatprep.subr.bf16.mxu1 %v2337_v0  ;;  %v2444_v29 = vld [vmem:[%s2827_s5 + $0x8] sm:$0xff]  }
   0x4   :  { %2008 = vmatpush3.msk.msra.mxu0 %vm52_vm0, %v37_v2  ;;  %2009 = vmatprep.mubr.msk.f32.mxu0 %vm45_vm1, %v35_v3  ;;  %v1858_v7 = vld [vmem:[%s2826_s3] ss:$0 sm:$0xff]  ;;  %s2340_s3 = smov 64   ;;  %v2457_v31 = vld [vmem:[%s2828_s4 + $0x8] sm:$0xff]  }
   0x5   :  { %2010 = vmatmul.mubr.msk.f32.vlgmr.msra.gmra.mrb[0].mxu0 %vm45_vm1, %v36_v4  ;;  %2020 = vmatprep.subr.bf16.mxu0 %v2337_v0  ;;  %v2439_v28 = vld [vmem:[%s2827_s5] sm:$0xff]  }
   0x6   :  { %2024 = vmatprep.mubr.msk.bf16.mxu0 %vm2338_vm2, %v2337_v0  ;;  %2015 = vmatpush3.bf16.msra.mxu1 %v2413_v5  ;;  %v2450_v30 = vld [vmem:[%s2828_s4] sm:$0xff]  }
   0x7   :  { %2028 = vmatprep.subr.bf16.mxu1 %v2337_v0  ;;  %2021 = vmatpush3.bf16.msra.mxu0 %v2439_v28  ;;  %v2489_v41 = vld [vmem:[%s2829_s6] ss:$0 sm:$0xff] }
   0x8   :  { %2022 = vmatprep.subr.bf16.mxu0 %v2337_v0 }
   0x9   :  { %2017 = vmatmul.mubr.bf16.vlgmr.msra.gmra.mrb[0].mxu1 %v2339_v6 }
   0xa   :  { %2032 = vmatprep.mubr.msk.bf16.mxu1 %vm2338_vm2, %v2337_v0  ;;  %2029 = vmatpush3.bf16.msra.mxu1 %v2450_v30 }
   0xb   :  { %2030 = vmatprep.subr.bf16.mxu1 %v2337_v0  ;;  %2023 = vmatpush3.bf16.msra.mxu0 %v2444_v29 }
   0xc   :  { %2036 = vmatprep.subr.bf16.mxu0 %v2337_v0 }
   0xe   :  { %2031 = vmatpush3.bf16.msra.mxu1 %v2457_v31  ;;  %2025 = vmatmul.mubr.bf16.vlgmr.msra.gmra.mrb[4].mxu0 %v2339_v6 }
   0xf   :  { %2044 = vmatprep.subr.bf16.mxu1 %v2337_v0  ;;  %2037 = vmatpush3.bf16.msra.mxu0 %v2396_v1 }
  0x10   :  { %2040 = vmatprep.mubr.msk.bf16.mxu0 %vm2338_vm2, %v2337_v0  ;;  %2038 = vmatprep.subr.bf16.mxu0 %v2337_v0 }
  0x13   :  { %2039 = vmatpush3.bf16.msra.mxu0 %v2413_v5 }
  0x14   :  { %2052 = vmatprep.subr.bf16.mxu0 %v2337_v0 }
  0xd8   :  { %v2011_v8 = vpop.f32.mrb[0].mxu0 }
  0xd9   :  { %v2426_v9 = vadd.f32 %v2011_v8, %v1858_v7  ;;  %v122_v10 = vpop.f32.mrb[1].mxu0 }
  0xda   :  { %v2428_v11 = vadd.f32 %v1858_v7, %v122_v10 }
  0xdc   :  { %v194_v12 = vpop.f32.mrb[0].mxu1 }
  0xdd   :  { %v200_v13 = vadd.f32 %v194_v12, %v2428_v11  ;;  %v2018_v14 = vpop.f32.mrb[1].mxu1 }
  0xde   :  { %v197_v15 = vpop.f32.mrb[2].mxu1 }
  0xdf   :  { %v1864_v16 = vmul.f32 -1.442695, %v200_v13  ;;  %v2019_v17 = vpop.f32.mrb[3].mxu1 }
  0xe1   :  { %2234 = vpow2.f32 %v1864_v16  ;;  %v273_v36 = vpop.f32.mrb[4].mxu0 }
  0xe2   :  { %v2026_v37 = vpop.f32.mrb[5].mxu0 }
  0xe3   :  { %v276_v38 = vpop.f32.mrb[6].mxu0 }
  0xe4   :  { %v2027_v39 = vpop.f32.mrb[7].mxu0 }
  0xeb   :  { %v2235_v18 = vpop.eup %2234 }
  0xec   :  { %v204_v19 = vadd.f32 1.0, %v2235_v18 }
  0xee   :  { %2236 = vrcp.f32 %v204_v19 }
  0xf8   :  { %v2237_v20 = vpop.eup %2236 }
  0xf9   :  { %v207_v21 = vmul.f32 2.0, %v2237_v20  ;;  %v209_v25 = vmul.f32 0.0, %v2237_v20 }
  0xfb   :  { %v1865_v22 = vadd.f32 -1.0, %v207_v21 }
  0xfd   :  { %211 = vrot.lane.b32.xlu0 %v1865_v22, %s2340_s3 }
 0x16f   :  { %v212_v23 = vpop.permute.xlu0 %211 }
 0x170   :  { %v214_v24 = vmul.f32 %v2237_v20, %v212_v23 }
 0x172   :  { %216 = vrot.lane.b32.xlu0 %v214_v24, %s2341_s19 }
 0x1e4   :  { %v217_v26 = vpop.permute.xlu0 %216 }
 0x1e5   :  { %v2433_v27 = vadd.f32 %v217_v26, %v209_v25 }
 0x1e7   :  { %2238 = vtanh.f32 %v2433_v27  ;;  %v428_v10 = vrot.slane %v2433_v27, 6 }
 0x1f1   :  { %v2239_v32 = vpop.eup %2238 }
 0x1f2   :  { %222 = vrot.lane.b32.xlu1 %v2239_v32, %s2340_s3 }
 0x264   :  { %v223_v33 = vpop.permute.xlu1 %222 }
 0x265   :  { %v225_v34 = vmul.f32 %v2237_v20, %v223_v33 }
 0x267   :  { %v226_v35 = vpack.c.bf16 %v225_v34, %v225_v34 }
 0x269   :  { %280 = vrot.lane.b32.xlu1 %v226_v35, %s2341_s19 }
 0x2db   :  { %v281_v40 = vpop.permute.xlu1 %280 }
 0x2dc   :  { %2033 = vmatmul.mubr.msk.bf16.vlgmr.msra.gmra.mrb[4].mxu1 %vm156_vm3, %v281_v40  ;;  %2041 = vmatmul.mubr.msk.bf16.vlgmr.msra.gmra.mrb[8].mxu0 %vm156_vm3, %v281_v40 }
 0x2dd   :  { %2045 = vmatpush3.bf16.msra.mxu1 %v2439_v28  ;;  %2053 = vmatpush3.bf16.msra.mxu0 %v2450_v30 }
 0x2de   :  { %2046 = vmatprep.subr.bf16.mxu1 %v2337_v0  ;;  %2054 = vmatprep.subr.bf16.mxu0 %v2337_v0 }
 0x2df   :  { %2048 = vmatprep.mubr.msk.bf16.mxu1 %vm2338_vm2, %v2337_v0  ;;  %2056 = vmatprep.mubr.msk.bf16.mxu0 %vm2338_vm2, %v2337_v0 }
 0x2e1   :  { %2047 = vmatpush3.bf16.msra.mxu1 %v2444_v29  ;;  %2055 = vmatpush3.bf16.msra.mxu0 %v2457_v31 }
 0x2e2   :  { %2060 = vmatprep.subr.bf16.mxu1 %v2337_v0  ;;  %2068 = vmatprep.subr.bf16.mxu0 %v2337_v0 }
 0x3af   :  { %v331_v42 = vpop.f32.mrb[4].mxu1  ;;  %v409_v43 = vpop.f32.mrb[8].mxu0 }
 0x3b0   :  { %v332_v44 = vadd.f32 %v331_v42, %v273_v36  ;;  %v416_v45 = vrot.slane %v409_v43, 6  ;;  %v2034_v46 = vpop.f32.mrb[5].mxu1  ;;  %v2042_v47 = vpop.f32.mrb[9].mxu0 }
 0x3b1   :  { %v334_v48 = vpop.f32.mrb[6].mxu1  ;;  %v412_v49 = vpop.f32.mrb[10].mxu0 }
 0x3b2   :  { %v343_v50 = vadd.f32 %v2489_v41, %v332_v44  ;;  %v418_v51 = vadd.f32 %v416_v45, %v2428_v11  ;;  %v2035_v52 = vpop.f32.mrb[7].mxu1  ;;  %v2043_v53 = vpop.f32.mrb[11].mxu0 }
 0x3b4   :  { %v1872_v54 = vmul.f32 -1.442695, %v343_v50  ;;  %v1875_v55 = vmul.f32 -1.442695, %v418_v51 }
 0x3b6   :  { %2240 = vpow2.f32 %v1872_v54 }
 0x3b7   :  { %2242 = vpow2.f32 %v1875_v55 }
 0x3c0   :  { %v2241_v56 = vpop.eup %2240 }
 0x3c1   :  { %v2243_v57 = vpop.eup %2242  ;;  %v347_v58 = vadd.f32 1.0, %v2241_v56 }
 0x3c2   :  { %v422_v59 = vadd.f32 1.0, %v2243_v57 }
 0x3c3   :  { %2244 = vrcp.f32 %v347_v58 }
 0x3c4   :  { %2246 = vrcp.f32 %v422_v59 }
 0x3cd   :  { %v2245_v60 = vpop.eup %2244 }
 0x3ce   :  { %v2247_v61 = vpop.eup %2246  ;;  %v350_v62 = vmul.f32 2.0, %v2245_v60  ;;  %v352_v12 = vmul.f32 0.0, %v2245_v60 }
 0x3cf   :  { %v425_v63 = vmul.f32 2.0, %v2247_v61  ;;  %v430_v13 = vmul.f32 %v2247_v61, %v428_v10 }
 0x3d0   :  { %v1873_v2 = vadd.f32 -1.0, %v350_v62 }
 0x3d1   :  { %v1876_v3 = vadd.f32 -1.0, %v425_v63 }
 0x3d2   :  { %354 = vrot.lane.b32.xlu0 %v1873_v2, %s2340_s3 }
 0x3d3   :  { %432 = vrot.lane.b32.xlu1 %v1876_v3, %s2340_s3 }
 0x444   :  { %v355_v4 = vpop.permute.xlu0 %354 }
 0x445   :  { %v433_v6 = vpop.permute.xlu1 %432  ;;  %v357_v7 = vmul.f32 %v2245_v60, %v355_v4 }
 0x446   :  { %v435_v8 = vmul.f32 %v2247_v61, %v433_v6 }
 0x447   :  { %359 = vrot.lane.b32.xlu0 %v357_v7, %s2341_s19 }
 0x448   :  { %437 = vrot.lane.b32.xlu1 %v435_v8, %s2341_s19 }
 0x4b9   :  { %v360_v14 = vpop.permute.xlu0 %359 }
 0x4ba   :  { %v438_v15 = vpop.permute.xlu1 %437  ;;  %v2498_v16 = vadd.f32 %v360_v14, %v352_v12 }
 0x4bb   :  { %v2500_v17 = vadd.f32 %v438_v15, %v430_v13 }
 0x4bc   :  { %2248 = vtanh.f32 %v2498_v16 }
 0x4bd   :  { %2250 = vtanh.f32 %v2500_v17  ;;  %v626_v8 = vrot.slane %v2500_v17, 6 }
 0x4c6   :  { %v2249_v18 = vpop.eup %2248 }
 0x4c7   :  { %v2251_v19 = vpop.eup %2250  ;;  %365 = vrot.lane.b32.xlu0 %v2249_v18, %s2340_s3 }
 0x4c8   :  { %443 = vrot.lane.b32.xlu1 %v2251_v19, %s2340_s3 }
 0x539   :  { %v366_v20 = vpop.permute.xlu0 %365 }
 0x53a   :  { %v444_v21 = vpop.permute.xlu1 %443  ;;  %v2506_v22 = vmul.f32 %v2245_v60, %v366_v20 }
 0x53b   :  { %v446_v23 = vmul.f32 %v2247_v61, %v444_v21 }
 0x53c   :  { %v448_v24 = vpack.c.bf16 %v2506_v22, %v2506_v22 }
 0x53d   :  { %v447_v25 = vpack.c.bf16 %v446_v23, %v446_v23 }
 0x53e   :  { %450 = vrot.lane.b32.xlu0 %v448_v24, %s2341_s19 }
 0x53f   :  { %v496_v26 = vrot.slane %v447_v25, 1 }
 0x541   :  { %497 = vrot.lane.b32.xlu1 %v496_v26, %s2341_s19 }
 0x5b0   :  { %v451_v27 = vpop.permute.xlu0 %450 }
 0x5b1   :  { %2049 = vmatmul.mubr.msk.bf16.vlgmr.msra.gmra.mrb[8].mxu1 %vm156_vm3, %v451_v27 }
 0x5b2   :  { %2061 = vmatpush3.bf16.msra.mxu1 %v2396_v1  ;;  %2064 = vmatprep.mubr.msk.bf16.mxu1 %vm2338_vm2, %v2337_v0 }
 0x5b3   :  { %v498_v32 = vpop.permute.xlu1 %497  ;;  %2062 = vmatprep.subr.bf16.mxu1 %v2337_v0 }
 0x5b4   :  { %2057 = vmatmul.mubr.msk.bf16.vlgmr.msra.gmra.mrb[12].mxu0 %vm156_vm3, %v498_v32 }
 0x5b5   :  { %2069 = vmatpush3.bf16.msra.mxu0 %v2439_v28  ;;  %2072 = vmatprep.mubr.msk.bf16.mxu0 %vm2338_vm2, %v2337_v0 }
 0x5b6   :  { %2063 = vmatpush3.bf16.msra.mxu1 %v2413_v5  ;;  %2070 = vmatprep.subr.bf16.mxu0 %v2337_v0 }
 0x5b7   :  { %2076 = vmatprep.subr.bf16.mxu1 %v2337_v0 }
 0x5b9   :  { %2065 = vmatmul.mubr.msk.bf16.vlgmr.msra.gmra.mrb[12].mxu1 %vm156_vm3, %v498_v32  ;;  %2071 = vmatpush3.bf16.msra.mxu0 %v2444_v29 }
 0x5ba   :  { %2084 = vmatprep.subr.bf16.mxu0 %v2337_v0  ;;  %2077 = vmatpush3.bf16.msra.mxu1 %v2450_v30 }
 0x5bb   :  { %2078 = vmatprep.subr.bf16.mxu1 %v2337_v0  ;;  %2080 = vmatprep.mubr.msk.bf16.mxu1 %vm2338_vm2, %v2337_v0 }
 0x5be   :  { %2079 = vmatpush3.bf16.msra.mxu1 %v2457_v31 }
 0x5bf   :  { %2092 = vmatprep.subr.bf16.mxu1 %v2337_v0 }
 0x684   :  { %v489_v33 = vpop.f32.mrb[8].mxu1 }
 0x685   :  { %v2050_v34 = vpop.f32.mrb[9].mxu1 }
 0x686   :  { %v492_v35 = vpop.f32.mrb[10].mxu1 }
 0x687   :  { %v536_v36 = vpop.f32.mrb[12].mxu0  ;;  %v2051_v37 = vpop.f32.mrb[11].mxu1 }
 0x688   :  { %v537_v38 = vadd.f32 %v536_v36, %v489_v33  ;;  %v2058_v39 = vpop.f32.mrb[13].mxu0 }
 0x689   :  { %v539_v40 = vpop.f32.mrb[14].mxu0 }
 0x68a   :  { %v542_v42 = vadd.f32 %v2489_v41, %v537_v38  ;;  %v2059_v43 = vpop.f32.mrb[15].mxu0 }
 0x68c   :  { %v1879_v44 = vmul.f32 -1.442695, %v542_v42  ;;  %v607_v45 = vpop.f32.mrb[12].mxu1 }
 0x68d   :  { %v614_v46 = vrot.slane %v607_v45, 4  ;;  %v2066_v47 = vpop.f32.mrb[13].mxu1 }
 0x68e   :  { %2252 = vpow2.f32 %v1879_v44  ;;  %v610_v48 = vpop.f32.mrb[14].mxu1 }
 0x68f   :  { %v616_v49 = vadd.f32 %v614_v46, %v2428_v11  ;;  %v2067_v50 = vpop.f32.mrb[15].mxu1 }
 0x691   :  { %v1882_v51 = vmul.f32 -1.442695, %v616_v49 }
 0x693   :  { %2254 = vpow2.f32 %v1882_v51 }
 0x698   :  { %v2253_v52 = vpop.eup %2252 }
 0x699   :  { %v546_v53 = vadd.f32 1.0, %v2253_v52 }
 0x69b   :  { %2256 = vrcp.f32 %v546_v53 }
 0x69d   :  { %v2255_v54 = vpop.eup %2254 }
 0x69e   :  { %v620_v55 = vadd.f32 1.0, %v2255_v54 }
 0x6a0   :  { %2258 = vrcp.f32 %v620_v55 }
 0x6a5   :  { %v2257_v56 = vpop.eup %2256 }
 0x6a6   :  { %v549_v57 = vmul.f32 2.0, %v2257_v56  ;;  %v551_v4 = vmul.f32 %v2257_v56, %v2498_v16 }
 0x6a8   :  { %v1880_v58 = vadd.f32 -1.0, %v549_v57 }
 0x6aa   :  { %v2259_v59 = vpop.eup %2258  ;;  %553 = vrot.lane.b32.xlu0 %v1880_v58, %s2340_s3 }
 0x6ab   :  { %v623_v60 = vmul.f32 2.0, %v2259_v59  ;;  %v628_v10 = vmul.f32 %v2259_v59, %v626_v8 }
 0x6ad   :  { %v1883_v61 = vadd.f32 -1.0, %v623_v60 }
 0x6af   :  { %630 = vrot.lane.b32.xlu1 %v1883_v61, %s2340_s3 }
 0x71c   :  { %v554_v62 = vpop.permute.xlu0 %553 }
 0x71d   :  { %v556_v63 = vmul.f32 %v2257_v56, %v554_v62 }
 0x71f   :  { %558 = vrot.lane.b32.xlu0 %v556_v63, %s2341_s19 }
 0x721   :  { %v631_v2 = vpop.permute.xlu1 %630 }
 0x722   :  { %v633_v3 = vmul.f32 %v2259_v59, %v631_v2 }
 0x724   :  { %635 = vrot.lane.b32.xlu1 %v633_v3, %s2341_s19 }
 0x791   :  { %v559_v6 = vpop.permute.xlu0 %558 }
 0x792   :  { %v2540_v7 = vadd.f32 %v559_v6, %v551_v4 }
 0x794   :  { %2260 = vtanh.f32 %v2540_v7 }
 0x796   :  { %v636_v12 = vpop.permute.xlu1 %635 }
 0x797   :  { %v2544_v13 = vadd.f32 %v636_v12, %v628_v10 }
 0x799   :  { %2262 = vtanh.f32 %v2544_v13  ;;  %v824_v62 = vrot.slane %v2544_v13, 6 }
 0x79e   :  { %v2261_v14 = vpop.eup %2260 }
 0x79f   :  { %564 = vrot.lane.b32.xlu0 %v2261_v14, %s2340_s3 }
 0x7a3   :  { %v2263_v15 = vpop.eup %2262 }
 0x7a4   :  { %641 = vrot.lane.b32.xlu1 %v2263_v15, %s2340_s3 }
 0x811   :  { %v565_v16 = vpop.permute.xlu0 %564 }
 0x812   :  { %v2549_v18 = vmul.f32 %v2257_v56, %v565_v16 }
 0x814   :  { %v646_v17 = vpack.c.bf16 %v2549_v18, %v2549_v18 }
 0x816   :  { %648 = vrot.lane.b32.xlu0 %v646_v17, %s2341_s19  ;;  %v642_v19 = vpop.permute.xlu1 %641 }
 0x817   :  { %v644_v20 = vmul.f32 %v2259_v59, %v642_v19 }
 0x819   :  { %v645_v21 = vpack.c.bf16 %v644_v20, %v644_v20 }
 0x81b   :  { %v694_v23 = vrot.slane %v645_v21, 2 }
 0x81d   :  { %695 = vrot.lane.b32.xlu1 %v694_v23, %s2341_s19 }
 0x888   :  { %v649_v24 = vpop.permute.xlu0 %648 }
 0x889   :  { %2073 = vmatmul.mubr.msk.bf16.vlgmr.msra.gmra.mrb[16].mxu0 %vm156_vm3, %v649_v24 }
 0x88a   :  { %2085 = vmatpush3.bf16.msra.mxu0 %v2396_v1  ;;  %2088 = vmatprep.mubr.msk.bf16.mxu0 %vm2338_vm2, %v2337_v0 }
 0x88b   :  { %2086 = vmatprep.subr.bf16.mxu0 %v2337_v0 }
 0x88e   :  { %2087 = vmatpush3.bf16.msra.mxu0 %v2413_v5 }
 0x88f   :  { %v696_v25 = vpop.permute.xlu1 %695  ;;  %2100 = vmatprep.subr.bf16.mxu0 %v2337_v0 }
 0x890   :  { %2081 = vmatmul.mubr.msk.bf16.vlgmr.msra.gmra.mrb[16].mxu1 %vm156_vm3, %v696_v25 }
 0x891   :  { %2089 = vmatmul.mubr.msk.bf16.vlgmr.msra.gmra.mrb[20].mxu0 %vm156_vm3, %v696_v25  ;;  %2093 = vmatpush3.bf16.msra.mxu1 %v2439_v28 }
 0x892   :  { %2101 = vmatpush3.bf16.msra.mxu0 %v2450_v30  ;;  %2094 = vmatprep.subr.bf16.mxu1 %v2337_v0 }
 0x893   :  { %2102 = vmatprep.subr.bf16.mxu0 %v2337_v0  ;;  %2096 = vmatprep.mubr.msk.bf16.mxu1 %vm2338_vm2, %v2337_v0 }
 0x894   :  { %2104 = vmatprep.mubr.msk.bf16.mxu0 %vm2338_vm2, %v2337_v0 }
 0x895   :  { %2095 = vmatpush3.bf16.msra.mxu1 %v2444_v29 }
 0x896   :  { %2103 = vmatpush3.bf16.msra.mxu0 %v2457_v31  ;;  %2108 = vmatprep.subr.bf16.mxu1 %v2337_v0 }
 0x897   :  { %2116 = vmatprep.subr.bf16.mxu0 %v2337_v0 }
 0x95c   :  { %v687_v26 = vpop.f32.mrb[16].mxu0 }
 0x95d   :  { %v2074_v27 = vpop.f32.mrb[17].mxu0 }
 0x95e   :  { %v690_v32 = vpop.f32.mrb[18].mxu0 }
 0x95f   :  { %v2075_v33 = vpop.f32.mrb[19].mxu0 }
 0x963   :  { %v734_v34 = vpop.f32.mrb[16].mxu1 }
 0x964   :  { %v735_v35 = vadd.f32 %v734_v34, %v687_v26  ;;  %v805_v36 = vpop.f32.mrb[20].mxu0  ;;  %v2082_v37 = vpop.f32.mrb[17].mxu1 }
 0x965   :  { %v812_v38 = vrot.slane %v805_v36, 2  ;;  %v2090_v39 = vpop.f32.mrb[21].mxu0  ;;  %v737_v40 = vpop.f32.mrb[18].mxu1 }
 0x966   :  { %v740_v42 = vadd.f32 %v2489_v41, %v735_v35  ;;  %v808_v43 = vpop.f32.mrb[22].mxu0  ;;  %v2083_v44 = vpop.f32.mrb[19].mxu1 }
 0x967   :  { %v814_v45 = vadd.f32 %v812_v38, %v2428_v11  ;;  %v2091_v46 = vpop.f32.mrb[23].mxu0 }
 0x968   :  { %v1886_v47 = vmul.f32 -1.442695, %v740_v42 }
 0x969   :  { %v1889_v48 = vmul.f32 -1.442695, %v814_v45 }
 0x96a   :  { %2264 = vpow2.f32 %v1886_v47 }
 0x96b   :  { %2266 = vpow2.f32 %v1889_v48 }
 0x974   :  { %v2265_v49 = vpop.eup %2264 }
 0x975   :  { %v2267_v50 = vpop.eup %2266  ;;  %v744_v51 = vadd.f32 1.0, %v2265_v49 }
 0x976   :  { %v818_v52 = vadd.f32 1.0, %v2267_v50 }
 0x977   :  { %2268 = vrcp.f32 %v744_v51 }
 0x978   :  { %2270 = vrcp.f32 %v818_v52 }
 0x981   :  { %v2269_v53 = vpop.eup %2268 }
 0x982   :  { %v2271_v54 = vpop.eup %2270  ;;  %v747_v55 = vmul.f32 2.0, %v2269_v53  ;;  %v749_v63 = vmul.f32 %v2269_v53, %v2540_v7 }
 0x983   :  { %v821_v56 = vmul.f32 2.0, %v2271_v54  ;;  %v826_v2 = vmul.f32 %v2271_v54, %v824_v62 }
 0x984   :  { %v1887_v57 = vadd.f32 -1.0, %v747_v55 }
 0x985   :  { %v1890_v58 = vadd.f32 -1.0, %v821_v56 }
 0x986   :  { %751 = vrot.lane.b32.xlu1 %v1887_v57, %s2340_s3 }
 0x987   :  { %828 = vrot.lane.b32.xlu0 %v1890_v58, %s2340_s3 }
 0x9f8   :  { %v752_v11 = vpop.permute.xlu1 %751 }
 0x9f9   :  { %v829_v59 = vpop.permute.xlu0 %828  ;;  %v754_v60 = vmul.f32 %v2269_v53, %v752_v11 }
 0x9fa   :  { %v831_v61 = vmul.f32 %v2271_v54, %v829_v59 }
 0x9fb   :  { %756 = vrot.lane.b32.xlu1 %v754_v60, %s2341_s19 }
 0x9fc   :  { %833 = vrot.lane.b32.xlu0 %v831_v61, %s2341_s19 }
 0xa6d   :  { %v757_v3 = vpop.permute.xlu1 %756 }
 0xa6e   :  { %v834_v4 = vpop.permute.xlu0 %833  ;;  %v2584_v6 = vadd.f32 %v757_v3, %v749_v63 }
 0xa6f   :  { %v2586_v8 = vadd.f32 %v834_v4, %v826_v2 }
 0xa70   :  { %2272 = vtanh.f32 %v2584_v6 }
 0xa71   :  { %2274 = vtanh.f32 %v2586_v8  ;;  %v1019_v59 = vrot.slane %v2586_v8, 6 }
 0xa7a   :  { %v2273_v10 = vpop.eup %2272 }
 0xa7b   :  { %v2275_v12 = vpop.eup %2274  ;;  %762 = vrot.lane.b32.xlu1 %v2273_v10, %s2340_s3 }
 0xa7c   :  { %839 = vrot.lane.b32.xlu0 %v2275_v12, %s2340_s3 }
 0xaed   :  { %v763_v13 = vpop.permute.xlu1 %762 }
 0xaee   :  { %v840_v14 = vpop.permute.xlu0 %839  ;;  %v2592_v7 = vmul.f32 %v2269_v53, %v763_v13 }
 0xaef   :  { %v842_v15 = vmul.f32 %v2271_v54, %v840_v14 }
 0xaf0   :  { %v844_v16 = vpack.c.bf16 %v2592_v7, %v2592_v7 }
 0xaf1   :  { %v843_v17 = vpack.c.bf16 %v842_v15, %v842_v15 }
 0xaf2   :  { %846 = vrot.lane.b32.xlu0 %v844_v16, %s2341_s19 }
 0xaf3   :  { %v892_v19 = vrot.slane %v843_v17, 3 }
 0xaf5   :  { %893 = vrot.lane.b32.xlu1 %v892_v19, %s2341_s19 }
 0xb64   :  { %v847_v20 = vpop.permute.xlu0 %846 }
 0xb65   :  { %2097 = vmatmul.mubr.msk.bf16.vlgmr.msra.gmra.mrb[20].mxu1 %vm156_vm3, %v847_v20 }
 0xb66   :  { %2109 = vmatpush3.bf16.msra.mxu1 %v2396_v1  ;;  %2112 = vmatprep.mubr.msk.bf16.mxu1 %vm2338_vm2, %v2337_v0 }
 0xb67   :  { %v894_v21 = vpop.permute.xlu1 %893  ;;  %2110 = vmatprep.subr.bf16.mxu1 %v2337_v0 }
 0xb68   :  { %2105 = vmatmul.mubr.msk.bf16.vlgmr.msra.gmra.mrb[24].mxu0 %vm156_vm3, %v894_v21 }
 0xb69   :  { %2117 = vmatpush3.bf16.msra.mxu0 %v2439_v28  ;;  %2120 = vmatprep.mubr.msk.bf16.mxu0 %vm2338_vm2, %v2337_v0 }
 0xb6a   :  { %2111 = vmatpush3.bf16.msra.mxu1 %v2413_v5  ;;  %2118 = vmatprep.subr.bf16.mxu0 %v2337_v0 }
 0xb6b   :  { %2124 = vmatprep.subr.bf16.mxu1 %v2337_v0 }
 0xb6d   :  { %2113 = vmatmul.mubr.msk.bf16.vlgmr.msra.gmra.mrb[24].mxu1 %vm156_vm3, %v894_v21  ;;  %2119 = vmatpush3.bf16.msra.mxu0 %v2444_v29 }
 0xb6e   :  { %2125 = vmatpush3.bf16.msra.mxu1 %v2450_v30  ;;  %2132 = vmatprep.subr.bf16.mxu0 %v2337_v0 }
 0xb6f   :  { %2126 = vmatprep.subr.bf16.mxu1 %v2337_v0  ;;  %2128 = vmatprep.mubr.msk.bf16.mxu1 %vm2338_vm2, %v2337_v0 }
 0xb72   :  { %2127 = vmatpush3.bf16.msra.mxu1 %v2457_v31 }
 0xb73   :  { %2140 = vmatprep.subr.bf16.mxu1 %v2337_v0 }
 0xc38   :  { %v885_v23 = vpop.f32.mrb[20].mxu1 }
 0xc39   :  { %v2098_v24 = vpop.f32.mrb[21].mxu1 }
 0xc3a   :  { %v888_v25 = vpop.f32.mrb[22].mxu1 }
 0xc3b   :  { %v932_v26 = vpop.f32.mrb[24].mxu0  ;;  %v2099_v27 = vpop.f32.mrb[23].mxu1 }
 0xc3c   :  { %v933_v32 = vadd.f32 %v932_v26, %v885_v23  ;;  %v2106_v33 = vpop.f32.mrb[25].mxu0 }
 0xc3d   :  { %v935_v34 = vpop.f32.mrb[26].mxu0 }
 0xc3e   :  { %v938_v35 = vadd.f32 %v2489_v41, %v933_v32  ;;  %v2107_v36 = vpop.f32.mrb[27].mxu0 }
 0xc40   :  { %v1893_v37 = vmul.f32 -1.442695, %v938_v35  ;;  %v1003_v38 = vpop.f32.mrb[24].mxu1 }
 0xc41   :  { %v1009_v39 = vadd.f32 %v1003_v38, %v2426_v9  ;;  %v2114_v40 = vpop.f32.mrb[25].mxu1 }
 0xc42   :  { %2276 = vpow2.f32 %v1893_v37  ;;  %v1006_v42 = vpop.f32.mrb[26].mxu1 }
 0xc43   :  { %v1896_v43 = vmul.f32 -1.442695, %v1009_v39  ;;  %v2115_v44 = vpop.f32.mrb[27].mxu1 }
 0xc45   :  { %2278 = vpow2.f32 %v1896_v43 }
 0xc4c   :  { %v2277_v45 = vpop.eup %2276 }
 0xc4d   :  { %v942_v46 = vadd.f32 1.0, %v2277_v45 }
 0xc4f   :  { %v2279_v47 = vpop.eup %2278  ;;  %2280 = vrcp.f32 %v942_v46 }
 0xc50   :  { %v1013_v48 = vadd.f32 1.0, %v2279_v47 }
 0xc52   :  { %2282 = vrcp.f32 %v1013_v48 }
 0xc59   :  { %v2281_v49 = vpop.eup %2280 }
 0xc5a   :  { %v945_v50 = vmul.f32 2.0, %v2281_v49  ;;  %v947_v11 = vmul.f32 %v2281_v49, %v2584_v6 }
 0xc5c   :  { %v2283_v51 = vpop.eup %2282  ;;  %v1894_v52 = vadd.f32 -1.0, %v945_v50 }
 0xc5d   :  { %v1016_v53 = vmul.f32 2.0, %v2283_v51  ;;  %v1021_v62 = vmul.f32 %v2283_v51, %v1019_v59 }
 0xc5e   :  { %949 = vrot.lane.b32.xlu0 %v1894_v52, %s2340_s3 }
 0xc5f   :  { %v1897_v54 = vadd.f32 -1.0, %v1016_v53 }
 0xc61   :  { %1023 = vrot.lane.b32.xlu1 %v1897_v54, %s2340_s3 }
 0xcd0   :  { %v950_v55 = vpop.permute.xlu0 %949 }
 0xcd1   :  { %v952_v56 = vmul.f32 %v2281_v49, %v950_v55 }
 0xcd3   :  { %954 = vrot.lane.b32.xlu0 %v952_v56, %s2341_s19  ;;  %v1024_v57 = vpop.permute.xlu1 %1023 }
 0xcd4   :  { %v1026_v58 = vmul.f32 %v2283_v51, %v1024_v57 }
 0xcd6   :  { %1028 = vrot.lane.b32.xlu1 %v1026_v58, %s2341_s19 }
 0xd45   :  { %v955_v60 = vpop.permute.xlu0 %954 }
 0xd46   :  { %v2627_v61 = vadd.f32 %v955_v60, %v947_v11 }
 0xd48   :  { %2284 = vtanh.f32 %v2627_v61  ;;  %v1029_v63 = vpop.permute.xlu1 %1028 }
 0xd49   :  { %v2630_v2 = vadd.f32 %v1029_v63, %v1021_v62 }
 0xd4b   :  { %2286 = vtanh.f32 %v2630_v2  ;;  %v1216_v11 = vrot.slane %v2630_v2, 6 }
 0xd52   :  { %v2285_v3 = vpop.eup %2284 }
 0xd53   :  { %960 = vrot.lane.b32.xlu0 %v2285_v3, %s2340_s3 }
 0xd55   :  { %v2287_v4 = vpop.eup %2286 }
 0xd56   :  { %1034 = vrot.lane.b32.xlu1 %v2287_v4, %s2340_s3 }
 0xdc5   :  { %v961_v6 = vpop.permute.xlu0 %960 }
 0xdc6   :  { %v2635_v10 = vmul.f32 %v2281_v49, %v961_v6 }
 0xdc8   :  { %v1039_v8 = vpack.c.bf16 %v2635_v10, %v2635_v10  ;;  %v1035_v12 = vpop.permute.xlu1 %1034 }
 0xdc9   :  { %v1037_v13 = vmul.f32 %v2283_v51, %v1035_v12 }
 0xdca   :  { %1041 = vrot.lane.b32.xlu0 %v1039_v8, %s2341_s19 }
 0xdcb   :  { %v1038_v14 = vpack.c.bf16 %v1037_v13, %v1037_v13 }
 0xdcd   :  { %1087 = vrot.lane.b32.xlu1 %v1038_v14, %s2341_s19 }
 0xe3c   :  { %v1042_v15 = vpop.permute.xlu0 %1041 }
 0xe3d   :  { %2121 = vmatmul.mubr.msk.bf16.vlgmr.msra.gmra.mrb[28].mxu0 %vm156_vm3, %v1042_v15 }
 0xe3e   :  { %2133 = vmatpush3.bf16.msra.mxu0 %v2396_v1  ;;  %2136 = vmatprep.mubr.msk.bf16.mxu0 %vm2338_vm2, %v2337_v0 }
 0xe3f   :  { %2134 = vmatprep.subr.bf16.mxu0 %v2337_v0  ;;  %v1088_v16 = vpop.permute.xlu1 %1087 }
 0xe40   :  { %2129 = vmatmul.mubr.msk.bf16.vlgmr.msra.gmra.mrb[28].mxu1 %vm156_vm3, %v1088_v16 }
 0xe41   :  { %2141 = vmatpush3.bf16.msra.mxu1 %v2439_v28  ;;  %2144 = vmatprep.mubr.msk.bf16.mxu1 %vm2338_vm2, %v2337_v0 }
 0xe42   :  { %2135 = vmatpush3.bf16.msra.mxu0 %v2413_v5  ;;  %2142 = vmatprep.subr.bf16.mxu1 %v2337_v0 }
 0xe43   :  { %2148 = vmatprep.subr.bf16.mxu0 %v2337_v0 }
 0xe45   :  { %2137 = vmatmul.mubr.msk.bf16.vlgmr.msra.gmra.mrb[32].mxu0 %vm156_vm3, %v1088_v16  ;;  %2143 = vmatpush3.bf16.msra.mxu1 %v2444_v29 }
 0xe46   :  { %2149 = vmatpush3.bf16.msra.mxu0 %v2450_v30  ;;  %2156 = vmatprep.subr.bf16.mxu1 %v2337_v0 }
 0xe47   :  { %2150 = vmatprep.subr.bf16.mxu0 %v2337_v0  ;;  %2152 = vmatprep.mubr.msk.bf16.mxu0 %vm2338_vm2, %v2337_v0 }
 0xe4a   :  { %2151 = vmatpush3.bf16.msra.mxu0 %v2457_v31 }
 0xe4b   :  { %2164 = vmatprep.subr.bf16.mxu0 %v2337_v0 }
 0xf10   :  { %v1080_v17 = vpop.f32.mrb[28].mxu0 }
 0xf11   :  { %v2122_v19 = vpop.f32.mrb[29].mxu0 }
 0xf12   :  { %v1083_v20 = vpop.f32.mrb[30].mxu0 }
 0xf13   :  { %v2123_v21 = vpop.f32.mrb[31].mxu0  ;;  %v1126_v23 = vpop.f32.mrb[28].mxu1 }
 0xf14   :  { %v1127_v24 = vadd.f32 %v1126_v23, %v1080_v17  ;;  %v2130_v25 = vpop.f32.mrb[29].mxu1 }
 0xf15   :  { %v1129_v26 = vpop.f32.mrb[30].mxu1 }
 0xf16   :  { %v1132_v27 = vadd.f32 %v2489_v41, %v1127_v24  ;;  %v2131_v32 = vpop.f32.mrb[31].mxu1 }
 0xf18   :  { %v1900_v33 = vmul.f32 -1.442695, %v1132_v27  ;;  %v1197_v34 = vpop.f32.mrb[32].mxu0 }
 0xf19   :  { %v1204_v35 = vrot.slane %v1197_v34, 6  ;;  %v2138_v36 = vpop.f32.mrb[33].mxu0 }
 0xf1a   :  { %2288 = vpow2.f32 %v1900_v33  ;;  %v1200_v37 = vpop.f32.mrb[34].mxu0 }
 0xf1b   :  { %v1206_v38 = vadd.f32 %v1204_v35, %v2426_v9  ;;  %v2139_v39 = vpop.f32.mrb[35].mxu0 }
 0xf1d   :  { %v1903_v40 = vmul.f32 -1.442695, %v1206_v38 }
 0xf1f   :  { %2290 = vpow2.f32 %v1903_v40 }
 0xf24   :  { %v2289_v42 = vpop.eup %2288 }
 0xf25   :  { %v1136_v43 = vadd.f32 1.0, %v2289_v42 }
 0xf27   :  { %2292 = vrcp.f32 %v1136_v43 }
 0xf29   :  { %v2291_v44 = vpop.eup %2290 }
 0xf2a   :  { %v1210_v45 = vadd.f32 1.0, %v2291_v44 }
 0xf2c   :  { %2294 = vrcp.f32 %v1210_v45 }
 0xf31   :  { %v2293_v46 = vpop.eup %2292 }
 0xf32   :  { %v1139_v47 = vmul.f32 2.0, %v2293_v46  ;;  %v1141_v56 = vmul.f32 %v2293_v46, %v2627_v61 }
 0xf34   :  { %v1901_v48 = vadd.f32 -1.0, %v1139_v47 }
 0xf36   :  { %v2295_v49 = vpop.eup %2294  ;;  %1143 = vrot.lane.b32.xlu0 %v1901_v48, %s2340_s3 }
 0xf37   :  { %v1213_v50 = vmul.f32 2.0, %v2295_v49  ;;  %v1218_v59 = vmul.f32 %v2295_v49, %v1216_v11 }
 0xf39   :  { %v1904_v51 = vadd.f32 -1.0, %v1213_v50 }
 0xf3b   :  { %1220 = vrot.lane.b32.xlu1 %v1904_v51, %s2340_s3 }
 0xfa8   :  { %v1144_v52 = vpop.permute.xlu0 %1143 }
 0xfa9   :  { %v1146_v53 = vmul.f32 %v2293_v46, %v1144_v52 }
 0xfab   :  { %1148 = vrot.lane.b32.xlu0 %v1146_v53, %s2341_s19 }
 0xfad   :  { %v1221_v54 = vpop.permute.xlu1 %1220 }
 0xfae   :  { %v1223_v55 = vmul.f32 %v2295_v49, %v1221_v54 }
 0xfb0   :  { %1225 = vrot.lane.b32.xlu1 %v1223_v55, %s2341_s19 }
0x101d   :  { %v1149_v57 = vpop.permute.xlu0 %1148 }
0x101e   :  { %v2669_v58 = vadd.f32 %v1149_v57, %v1141_v56 }
0x1020   :  { %2296 = vtanh.f32 %v2669_v58 }
0x1022   :  { %v1226_v60 = vpop.permute.xlu1 %1225 }
0x1023   :  { %v2673_v62 = vadd.f32 %v1226_v60, %v1218_v59 }
0x1025   :  { %2298 = vtanh.f32 %v2673_v62 }
0x102a   :  { %v2297_v63 = vpop.eup %2296 }
0x102b   :  { %1154 = vrot.lane.b32.xlu0 %v2297_v63, %s2340_s3 }
0x102f   :  { %v2299_v3 = vpop.eup %2298 }
0x1030   :  { %1231 = vrot.lane.b32.xlu1 %v2299_v3, %s2340_s3 }
0x109d   :  { %v1155_v61 = vpop.permute.xlu0 %1154 }
0x109e   :  { %v2678_v4 = vmul.f32 %v2293_v46, %v1155_v61 }
0x10a0   :  { %v1236_v2 = vpack.c.bf16 %v2678_v4, %v2678_v4 }
0x10a2   :  { %v1232_v6 = vpop.permute.xlu1 %1231  ;;  %1238 = vrot.lane.b32.xlu0 %v1236_v2, %s2341_s19  ;;  %v2330_v2 = vld [vmem:[%s2823_s2] sm:$0xff]  }
0x10a3   :  { %v1234_v8 = vmul.f32 %v2295_v49, %v1232_v6  ;;  %v1414_v49 = vrot.slane %v2673_v62, 6 }
0x10a5   :  { %v1235_v12 = vpack.c.bf16 %v1234_v8, %v1234_v8  ;;  %v2331_v8 = vld [vmem:[%s2827_s5] sm:$0xff]  }
0x10a7   :  { %v1284_v13 = vrot.slane %v1235_v12, 1  ;;  %v2332_v12 = vld [vmem:[%s2823_s2 + $0x8] sm:$0xff]  }
0x10a9   :  { %1285 = vrot.lane.b32.xlu1 %v1284_v13, %s2341_s19  ;;  %v2333_v13 = vld [vmem:[%s2827_s5 + $0x8] sm:$0xff]  }
0x1114   :  { %v1239_v14 = vpop.permute.xlu0 %1238 }
0x1115   :  { %2145 = vmatmul.mubr.msk.bf16.vlgmr.msra.gmra.mrb[32].mxu1 %vm156_vm3, %v1239_v14  ;;  %v2334_v14 = vld [vmem:[%s2828_s4] sm:$0xff]  }
0x1116   :  { %2157 = vmatpush3.bf16.msra.mxu1 %v2396_v1  ;;  %2160 = vmatprep.mubr.msk.bf16.mxu1 %vm2338_vm2, %v2337_v0 }
0x1117   :  { %2158 = vmatprep.subr.bf16.mxu1 %v2337_v0 }
0x111a   :  { %2159 = vmatpush3.bf16.msra.mxu1 %v2413_v5 }
0x111b   :  { %v1286_v15 = vpop.permute.xlu1 %1285  ;;  %2172 = vmatprep.subr.bf16.mxu1 %v2337_v0 }
0x111c   :  { %2153 = vmatmul.mubr.msk.bf16.vlgmr.msra.gmra.mrb[36].mxu0 %vm156_vm3, %v1286_v15 }
0x111d   :  { %2161 = vmatmul.mubr.msk.bf16.vlgmr.msra.gmra.mrb[36].mxu1 %vm156_vm3, %v1286_v15  ;;  %2165 = vmatpush3.bf16.msra.mxu0 %v2439_v28  ;;  %v2335_v15 = vld [vmem:[%s2828_s4 + $0x8] sm:$0xff]  }
0x111e   :  { %2166 = vmatprep.subr.bf16.mxu0 %v2337_v0  ;;  %2173 = vmatpush3.bf16.msra.mxu1 %v2450_v30 }
0x111f   :  { %2168 = vmatprep.mubr.msk.bf16.mxu0 %vm2338_vm2, %v2337_v0  ;;  %2174 = vmatprep.subr.bf16.mxu1 %v2337_v0 }
0x1120   :  { %2176 = vmatprep.mubr.msk.bf16.mxu1 %vm2338_vm2, %v2337_v0 }
0x1121   :  { %2167 = vmatpush3.bf16.msra.mxu0 %v2444_v29 }
0x1122   :  { %2180 = vmatprep.subr.bf16.mxu0 %v2337_v0  ;;  %2175 = vmatpush3.bf16.msra.mxu1 %v2457_v31 }
0x1123   :  { %2188 = vmatprep.subr.bf16.mxu1 %v2337_v0 }
0x11e8   :  { %v1277_v1 = vpop.f32.mrb[32].mxu1 }
0x11e9   :  { %v2146_v5 = vpop.f32.mrb[33].mxu1 }
0x11ea   :  { %v1280_v28 = vpop.f32.mrb[34].mxu1 }
0x11eb   :  { %v2147_v30 = vpop.f32.mrb[35].mxu1 }
0x11ef   :  { %v1324_v16 = vpop.f32.mrb[36].mxu0 }
0x11f0   :  { %v1325_v17 = vadd.f32 %v1324_v16, %v1277_v1  ;;  %v2154_v19 = vpop.f32.mrb[37].mxu0  ;;  %v1395_v20 = vpop.f32.mrb[36].mxu1 }
0x11f1   :  { %v1327_v21 = vpop.f32.mrb[38].mxu0  ;;  %v1402_v23 = vrot.slane %v1395_v20, 4  ;;  %v2162_v24 = vpop.f32.mrb[37].mxu1 }
0x11f2   :  { %v1330_v25 = vadd.f32 %v2489_v41, %v1325_v17  ;;  %v2155_v29 = vpop.f32.mrb[39].mxu0  ;;  %v1398_v26 = vpop.f32.mrb[38].mxu1 }
0x11f3   :  { %v1404_v27 = vadd.f32 %v1402_v23, %v2426_v9  ;;  %v2163_v31 = vpop.f32.mrb[39].mxu1 }
0x11f4   :  { %v1907_v32 = vmul.f32 -1.442695, %v1330_v25 }
0x11f5   :  { %v1910_v33 = vmul.f32 -1.442695, %v1404_v27 }
0x11f6   :  { %2300 = vpow2.f32 %v1907_v32 }
0x11f7   :  { %2302 = vpow2.f32 %v1910_v33 }
0x1200   :  { %v2301_v34 = vpop.eup %2300 }
0x1201   :  { %v2303_v35 = vpop.eup %2302  ;;  %v1334_v36 = vadd.f32 1.0, %v2301_v34 }
0x1202   :  { %v1408_v37 = vadd.f32 1.0, %v2303_v35 }
0x1203   :  { %2304 = vrcp.f32 %v1334_v36 }
0x1204   :  { %2306 = vrcp.f32 %v1408_v37 }
0x120d   :  { %v2305_v38 = vpop.eup %2304 }
0x120e   :  { %v2307_v39 = vpop.eup %2306  ;;  %v1337_v40 = vmul.f32 2.0, %v2305_v38  ;;  %v1339_v50 = vmul.f32 %v2305_v38, %v2669_v58 }
0x120f   :  { %v1411_v42 = vmul.f32 2.0, %v2307_v39  ;;  %v1416_v52 = vmul.f32 %v2307_v39, %v1414_v49 }
0x1210   :  { %v1908_v43 = vadd.f32 -1.0, %v1337_v40 }
0x1211   :  { %v1911_v44 = vadd.f32 -1.0, %v1411_v42 }
0x1212   :  { %1341 = vrot.lane.b32.xlu0 %v1908_v43, %s2340_s3 }
0x1213   :  { %1418 = vrot.lane.b32.xlu1 %v1911_v44, %s2340_s3 }
0x1284   :  { %v1342_v45 = vpop.permute.xlu0 %1341 }
0x1285   :  { %v1344_v46 = vmul.f32 %v2305_v38, %v1342_v45  ;;  %v1419_v47 = vpop.permute.xlu1 %1418 }
0x1286   :  { %v1421_v48 = vmul.f32 %v2307_v39, %v1419_v47 }
0x1287   :  { %1346 = vrot.lane.b32.xlu0 %v1344_v46, %s2341_s19 }
0x1288   :  { %1423 = vrot.lane.b32.xlu1 %v1421_v48, %s2341_s19 }
0x12f9   :  { %v1347_v51 = vpop.permute.xlu0 %1346 }
0x12fa   :  { %v2713_v53 = vadd.f32 %v1347_v51, %v1339_v50  ;;  %v1424_v54 = vpop.permute.xlu1 %1423 }
0x12fb   :  { %v2715_v55 = vadd.f32 %v1424_v54, %v1416_v52 }
0x12fc   :  { %2308 = vtanh.f32 %v2713_v53 }
0x12fd   :  { %2310 = vtanh.f32 %v2715_v55  ;;  %v1612_v49 = vrot.slane %v2715_v55, 6 }
0x1306   :  { %v2309_v56 = vpop.eup %2308 }
0x1307   :  { %v2311_v57 = vpop.eup %2310  ;;  %1352 = vrot.lane.b32.xlu0 %v2309_v56, %s2340_s3 }
0x1308   :  { %1429 = vrot.lane.b32.xlu1 %v2311_v57, %s2340_s3 }
0x1379   :  { %v1353_v11 = vpop.permute.xlu0 %1352 }
0x137a   :  { %v2721_v59 = vmul.f32 %v2305_v38, %v1353_v11  ;;  %v1430_v58 = vpop.permute.xlu1 %1429 }
0x137b   :  { %v1432_v60 = vmul.f32 %v2307_v39, %v1430_v58 }
0x137c   :  { %v1434_v62 = vpack.c.bf16 %v2721_v59, %v2721_v59 }
0x137d   :  { %v1433_v63 = vpack.c.bf16 %v1432_v60, %v1432_v60 }
0x137e   :  { %1436 = vrot.lane.b32.xlu0 %v1434_v62, %s2341_s19 }
0x137f   :  { %v1482_v3 = vrot.slane %v1433_v63, 2 }
0x1381   :  { %1483 = vrot.lane.b32.xlu1 %v1482_v3, %s2341_s19 }
0x13f0   :  { %v1437_v61 = vpop.permute.xlu0 %1436 }
0x13f1   :  { %2169 = vmatmul.mubr.msk.bf16.vlgmr.msra.gmra.mrb[40].mxu0 %vm156_vm3, %v1437_v61 }
0x13f2   :  { %2181 = vmatpush3.bf16.msra.mxu0 %v2330_v2  ;;  %2184 = vmatprep.mubr.msk.bf16.mxu0 %vm2338_vm2, %v2337_v0 }
0x13f3   :  { %2182 = vmatprep.subr.bf16.mxu0 %v2337_v0  ;;  %v1484_v6 = vpop.permute.xlu1 %1483 }
0x13f4   :  { %2177 = vmatmul.mubr.msk.bf16.vlgmr.msra.gmra.mrb[40].mxu1 %vm156_vm3, %v1484_v6 }
0x13f5   :  { %2189 = vmatpush3.bf16.msra.mxu1 %v2331_v8  ;;  %2192 = vmatprep.mubr.msk.bf16.mxu1 %vm2338_vm2, %v2337_v0 }
0x13f6   :  { %2183 = vmatpush3.bf16.msra.mxu0 %v2332_v12  ;;  %2190 = vmatprep.subr.bf16.mxu1 %v2337_v0 }
0x13f7   :  { %2196 = vmatprep.subr.bf16.mxu0 %v2337_v0 }
0x13f9   :  { %2185 = vmatmul.mubr.msk.bf16.vlgmr.msra.gmra.mrb[44].mxu0 %vm156_vm3, %v1484_v6  ;;  %2191 = vmatpush3.bf16.msra.mxu1 %v2333_v13 }
0x13fa   :  { %2197 = vmatpush3.bf16.msra.mxu0 %v2334_v14  ;;  %2200 = vmatprep.mubr.msk.bf16.mxu0 %vm2338_vm2, %v2337_v0 }
0x13fb   :  { %2198 = vmatprep.subr.bf16.mxu0 %v2337_v0 }
0x13fe   :  { %2199 = vmatpush3.bf16.msra.mxu0 %v2335_v15 }
0x14c4   :  { %v1475_v1 = vpop.f32.mrb[40].mxu0 }
0x14c5   :  { %v2170_v5 = vpop.f32.mrb[41].mxu0 }
0x14c6   :  { %v1478_v28 = vpop.f32.mrb[42].mxu0 }
0x14c7   :  { %v2171_v30 = vpop.f32.mrb[43].mxu0  ;;  %v1522_v16 = vpop.f32.mrb[40].mxu1 }
0x14c8   :  { %v1523_v17 = vadd.f32 %v1522_v16, %v1475_v1  ;;  %v2178_v19 = vpop.f32.mrb[41].mxu1  ;;  %v2336_v1 = vld [vmem:[%s2829_s6] ss:$0 sm:$0xff] }
0x14c9   :  { %v1525_v20 = vpop.f32.mrb[42].mxu1 }
0x14ca   :  { %v1528_v21 = vadd.f32 %v2489_v41, %v1523_v17  ;;  %v2179_v23 = vpop.f32.mrb[43].mxu1 }
0x14cc   :  { %v1914_v24 = vmul.f32 -1.442695, %v1528_v21  ;;  %v1593_v25 = vpop.f32.mrb[44].mxu0 }
0x14cd   :  { %v1600_v29 = vrot.slane %v1593_v25, 2  ;;  %v2186_v0 = vpop.f32.mrb[45].mxu0 }
0x14ce   :  { %2312 = vpow2.f32 %v1914_v24  ;;  %v1596_v26 = vpop.f32.mrb[46].mxu0 }
0x14cf   :  { %v1602_v27 = vadd.f32 %v1600_v29, %v2426_v9  ;;  %v2187_v31 = vpop.f32.mrb[47].mxu0 }
0x14d1   :  { %v1917_v32 = vmul.f32 -1.442695, %v1602_v27 }
0x14d3   :  { %2314 = vpow2.f32 %v1917_v32  ;;  %v1760_v32 = vld [vmem:[%s2830_s7 + $0x8] sm:$0xff] }
0x14d8   :  { %v2313_v33 = vpop.eup %2312 }
0x14d9   :  { %v1532_v34 = vadd.f32 1.0, %v2313_v33 }
0x14db   :  { %2316 = vrcp.f32 %v1532_v34  ;;  %v1762_v34 = vld [vmem:[%s2830_s7 + $0x18] sm:$0xff] }
0x14dd   :  { %v2315_v35 = vpop.eup %2314 }
0x14de   :  { %v1606_v36 = vadd.f32 1.0, %v2315_v35 }
0x14e0   :  { %2318 = vrcp.f32 %v1606_v36  ;;  %v14_v36 = vstv %s2831_s8 }
0x14e1   :  { %15 = vst [vmem:[#allocation3] sm:$0x1] %v14_v36 }
0x14e5   :  { %v2317_v37 = vpop.eup %2316 }
0x14e6   :  { %v1535_v41 = vmul.f32 2.0, %v2317_v37  ;;  %v1537_v46 = vmul.f32 %v2317_v37, %v2713_v53 }
0x14e8   :  { %v1915_v38 = vadd.f32 -1.0, %v1535_v41 }
0x14ea   :  { %v2319_v39 = vpop.eup %2318  ;;  %1539 = vrot.lane.b32.xlu1 %v1915_v38, %s2340_s3 }
0x14eb   :  { %v1609_v40 = vmul.f32 2.0, %v2319_v39  ;;  %v1614_v50 = vmul.f32 %v2319_v39, %v1612_v49 }
0x14ed   :  { %v1918_v42 = vadd.f32 -1.0, %v1609_v40 }
0x14ef   :  { %1616 = vrot.lane.b32.xlu0 %v1918_v42, %s2340_s3 }
0x155c   :  { %v1540_v9 = vpop.permute.xlu1 %1539 }
0x155d   :  { %v1542_v43 = vmul.f32 %v2317_v37, %v1540_v9  ;;  %v1923_v9 = vld [vmem:[#allocation3] ss:$0 sm:$0xff] }
0x155f   :  { %1544 = vrot.lane.b32.xlu1 %v1542_v43, %s2341_s19 }
0x1561   :  { %v1617_v44 = vpop.permute.xlu0 %1616 }
0x1562   :  { %v1619_v45 = vmul.f32 %v2319_v39, %v1617_v44 }
0x1564   :  { %1621 = vrot.lane.b32.xlu0 %v1619_v45, %s2341_s19 }
0x15d1   :  { %v1545_v47 = vpop.permute.xlu1 %1544 }
0x15d2   :  { %v1547_v48 = vadd.f32 %v1545_v47, %v1537_v46 }
0x15d4   :  { %2320 = vtanh.f32 %v1547_v48 }
0x15d6   :  { %v1622_v51 = vpop.permute.xlu0 %1621 }
0x15d7   :  { %v1624_v52 = vadd.f32 %v1622_v51, %v1614_v50 }
0x15d9   :  { %2322 = vtanh.f32 %v1624_v52 }
0x15de   :  { %v2321_v54 = vpop.eup %2320 }
0x15df   :  { %1550 = vrot.lane.b32.xlu1 %v2321_v54, %s2340_s3 }
0x15e3   :  { %v2323_v56 = vpop.eup %2322 }
0x15e4   :  { %1627 = vrot.lane.b32.xlu0 %v2323_v56, %s2340_s3 }
0x1651   :  { %v1551_v57 = vpop.permute.xlu1 %1550 }
0x1652   :  { %v1553_v11 = vmul.f32 %v2317_v37, %v1551_v57 }
0x1654   :  { %v1632_v58 = vpack.c.bf16 %v1553_v11, %v1553_v11 }
0x1656   :  { %v1628_v60 = vpop.permute.xlu0 %1627  ;;  %1634 = vrot.lane.b32.xlu0 %v1632_v58, %s2341_s19 }
0x1657   :  { %v1630_v53 = vmul.f32 %v2319_v39, %v1628_v60 }
0x1659   :  { %v1631_v62 = vpack.c.bf16 %v1630_v53, %v1630_v53 }
0x165b   :  { %v1680_v55 = vrot.slane %v1631_v62, 3 }
0x165d   :  { %1681 = vrot.lane.b32.xlu1 %v1680_v55, %s2341_s19 }
0x16c8   :  { %v1635_v63 = vpop.permute.xlu0 %1634 }
0x16c9   :  { %2193 = vmatmul.mubr.msk.bf16.vlgmr.msra.gmra.mrb[44].mxu1 %vm156_vm3, %v1635_v63 }
0x16cf   :  { %v1682_v3 = vpop.permute.xlu1 %1681 }
0x16d0   :  { %2201 = vmatmul.mubr.msk.bf16.vlgmr.msra.gmra.mrb[48].mxu0 %vm156_vm3, %v1682_v3 }
0x179c   :  { %v1673_v61 = vpop.f32.mrb[44].mxu1 }
0x179d   :  { %v2194_v2 = vpop.f32.mrb[45].mxu1 }
0x179e   :  { %v1676_v6 = vpop.f32.mrb[46].mxu1 }
0x179f   :  { %v2195_v8 = vpop.f32.mrb[47].mxu1 }
0x17a3   :  { %v1720_v12 = vpop.f32.mrb[48].mxu0 }
0x17a4   :  { %v1721_v13 = vadd.f32 %v1720_v12, %v1673_v61  ;;  %v2202_v14 = vpop.f32.mrb[49].mxu0 }
0x17a5   :  { %v1723_v15 = vpop.f32.mrb[50].mxu0 }
0x17a6   :  { %v1726_v5 = vadd.f32 %v2336_v1, %v1721_v13  ;;  %v2203_v28 = vpop.f32.mrb[51].mxu0 }
0x17a8   :  { %v1921_v30 = vmul.f32 -1.442695, %v1726_v5 }
0x17aa   :  { %2324 = vpow2.f32 %v1921_v30 }
0x17b4   :  { %v2325_v16 = vpop.eup %2324 }
0x17b5   :  { %v1730_v17 = vadd.f32 1.0, %v2325_v16 }
0x17b7   :  { %2326 = vrcp.f32 %v1730_v17 }
0x17c1   :  { %v2327_v19 = vpop.eup %2326 }
0x17c2   :  { %v1733_v20 = vmul.f32 2.0, %v2327_v19  ;;  %v1735_v25 = vmul.f32 %v2327_v19, %v1547_v48 }
0x17c4   :  { %v1922_v21 = vadd.f32 -1.0, %v1733_v20 }
0x17c6   :  { %1737 = vrot.lane.b32.xlu0 %v1922_v21, %s2340_s3 }
0x1838   :  { %v1738_v23 = vpop.permute.xlu0 %1737 }
0x1839   :  { %v1740_v24 = vmul.f32 %v2327_v19, %v1738_v23 }
0x183b   :  { %1742 = vrot.lane.b32.xlu1 %v1740_v24, %s2341_s19 }
0x183f   :  { %370 = vrot.lane.b32.xlu1 %v2506_v22, %s2341_s19 }
0x1843   :  { %767 = vrot.lane.b32.xlu1 %v2592_v7, %s2341_s19 }
0x1847   :  { %1159 = vrot.lane.b32.xlu1 %v2678_v4, %s2341_s19  ;;  %v1759_v4 = vld [vmem:[%s2830_s7] sm:$0xff] }
0x1848   :  { %v2215_v33 = vpack.c.bf16 %v1760_v32, %v1759_v4 }
0x184a   :  { %2216 = vmatprep.subr.bf16.mxu1 %v2215_v33 }
0x184b   :  { %1555 = vrot.lane.b32.xlu1 %v1553_v11, %s2341_s19  ;;  %2218 = vmatpush3.bf16.msra.mxu1 %v2215_v33 }
0x18ad   :  { %v1743_v29 = vpop.permute.xlu1 %1742 }
0x18ae   :  { %v1745_v0 = vadd.f32 %v1743_v29, %v1735_v25 }
0x18b0   :  { %2328 = vtanh.f32 %v1745_v0 }
0x18b1   :  { %v371_v26 = vpop.permute.xlu1 %370 }
0x18b2   :  { %374 = vst.msk [vmem:[#allocation2] sm:$0x3] %vm373_vm4, %v371_v26 }
0x18b5   :  { %v768_v27 = vpop.permute.xlu1 %767 }
0x18b6   :  { %770 = vst.msk [vmem:[#allocation2 + $0x4] sm:$0x3] %vm373_vm4, %v768_v27 }
0x18b9   :  { %v1160_v22 = vpop.permute.xlu1 %1159 }
0x18ba   :  { %v2329_v31 = vpop.eup %2328  ;;  %1162 = vst.msk [vmem:[#allocation2 + $0x8] sm:$0x3] %vm373_vm4, %v1160_v22 }
0x18bb   :  { %1748 = vrot.lane.b32.xlu0 %v2329_v31, %s2340_s3 }
0x18bd   :  { %v1556_v7 = vpop.permute.xlu1 %1555 }
0x18be   :  { %1558 = vst.msk [vmem:[#allocation2 + $0xc] sm:$0x3] %vm373_vm4, %v1556_v7 }
0x18bf   :  { %569 = vrot.lane.b32.xlu0 %v2549_v18, %s2341_s19  ;;  %v1761_v18 = vld [vmem:[%s2830_s7 + $0x10] sm:$0xff] }
0x18c0   :  { %v2219_v35 = vpack.c.bf16 %v1762_v34, %v1761_v18 }
0x18c2   :  { %2220 = vmatprep.subr.bf16.mxu1 %v2219_v35 }
0x18c3   :  { %965 = vrot.lane.b32.xlu0 %v2635_v10, %s2341_s19  ;;  %2222 = vmatpush3.bf16.msra.mxu1 %v2219_v35 }
0x18c7   :  { %1357 = vrot.lane.b32.xlu0 %v2721_v59, %s2341_s19 }
0x192d   :  { %v1749_v10 = vpop.permute.xlu0 %1748 }
0x192e   :  { %v1751_v37 = vmul.f32 %v2327_v19, %v1749_v10 }
0x1930   :  { %1753 = vrot.lane.b32.xlu0 %v1751_v37, %s2341_s19 }
0x1931   :  { %v570_v59 = vpop.permute.xlu0 %569 }
0x1932   :  { %572 = vst.msk [vmem:[#allocation2 + $0x2] sm:$0x3] %vm373_vm4, %v570_v59 }
0x1935   :  { %v966_v41 = vpop.permute.xlu0 %965 }
0x1936   :  { %968 = vst.msk [vmem:[#allocation2 + $0x6] sm:$0x3] %vm373_vm4, %v966_v41 }
0x1939   :  { %v1358_v38 = vpop.permute.xlu0 %1357 }
0x193a   :  { %1360 = vst.msk [vmem:[#allocation2 + $0xa] sm:$0x3] %vm373_vm4, %v1358_v38 }
0x193d   :  { %v1757_v39 = vld [vmem:[#allocation2] sm:$0xff] }
0x193e   :  { %2212 = vmatprep.mubr.msk.f32.mxu1 %vm156_vm3, %v1757_v39 }
0x19a2   :  { %v1754_v40 = vpop.permute.xlu0 %1753 }
0x19a3   :  { %1756 = vst.msk [vmem:[#allocation2 + $0xe] sm:$0x3] %vm373_vm4, %v1754_v40 }
0x19aa   :  { %v1758_v42 = vld [vmem:[#allocation2 + $0x8] sm:$0xff] }
0x19ab   :  { %2213 = vmatmul.mubr.msk.f32.vlgmr.msra.gmra.mrb[48].mxu1 %vm156_vm3, %v1758_v42 }
0x1a7e   :  { %v2214_v43 = vpop.f32.mrb[48].mxu1 }
0x1a7f   :  { %v1848_v44 = vadd.f32 %v2214_v43, %v1923_v9  ;;  %v1842_v45 = vpop.f32.mrb[49].mxu1 }
0x1a80   :  { %v1843_v46 = vadd.f32 %v1923_v9, %v1842_v45 }
0x1a81   :  { %1853 = vst.msk [vmem:[%s2832_s9 + $0x8] sm:$0xff] %vm1851_vm5, %v1848_v44 }
0x1a82   :  { %1852 = vst.msk [vmem:[%s2832_s9] sm:$0xff] %vm1851_vm5, %v1843_v46 }

</bundles_post_ra>
